<compile_context>
chip_gen: v7x
topology: tpu7x:2x2x1
jax: 0.10.0
libtpu: 0.0.40
codegen_flags: <defaults>
</compile_context>

<pallas_src>
import functools
import math

import jax
import jax.numpy as jnp
from jax.experimental import pallas as pl
from jax.experimental.pallas import tpu as pltpu


# ----------------------------- model dimensions -----------------------------

VOCAB = 100
MAX_POS = 16
HIDDEN = 32
NUM_HEADS = 2
HEAD_DIM = HIDDEN // NUM_HEADS
INTERMEDIATE = 64
NUM_LAYERS = 2
OUTPUT_SIZE = 4
FC_PAD = 128          # lane-dense padded width of the final logits slab
OUT_SUBLANES = 8      # sublane padding of the per-batch output block

# ---- pslab row layout (all 1-row vectors packed into one (rows, 128) slab) ----
_PROWS_PER_LAYER = 8
(_ROW_BQKV, _ROW_BO, _ROW_LN1G, _ROW_LN1B,
 _ROW_B1, _ROW_B2, _ROW_LN2G, _ROW_LN2B) = range(8)
_ROW_EMB_LN_G = _PROWS_PER_LAYER * NUM_LAYERS          # 16
_ROW_EMB_LN_B = _ROW_EMB_LN_G + 1                      # 17
_ROW_FC_B = _ROW_EMB_LN_G + 2                          # 18
_ROW_FC_W = 24                                         # sublane-aligned fc-weight start
_PSLAB_ROWS = _ROW_FC_W + HIDDEN                       # 56

# ---- wslab row layout (per layer): [wqkv(32) | wo(32) | w1(32) | w2(64)], 96 cols ----
_WROW_QKV = 0
_WROW_O = HIDDEN
_WROW_W1 = 2 * HIDDEN
_WROW_W2 = 3 * HIDDEN
_WSLAB_ROWS = 3 * HIDDEN + INTERMEDIATE                # 160
_WSLAB_COLS = 3 * HIDDEN                               # 96


# ----------------------------- fused Pallas kernel -----------------------------

def _erf(z):
    # Abramowitz & Stegun 7.1.26 rational approximation (|err| <= 1.5e-7 with exact
    # divide); the divide is replaced by an EUP approx reciprocal per the perf review.
    a1, a2, a3, a4, a5 = 0.254829592, -0.284496736, 1.421413741, -1.453152027, 1.061405429
    p = 0.3275911
    sgn = jnp.where(z < 0.0, -1.0, 1.0)
    za = jnp.abs(z)
    t = pl.reciprocal(1.0 + p * za, approx=True)
    poly = t * (a1 + t * (a2 + t * (a3 + t * (a4 + t * a5))))
    return sgn * (1.0 - poly * jnp.exp(-za * za))


def _gelu_exact(x):
    # Exact (erf) GELU, matching PyTorch / HF BERT (not the tanh approximation).
    return 0.5 * x * (1.0 + _erf(x * 0.7071067811865476))


def _emotion_fused_kernel(ids_ref, mask_ref,                 # SMEM scalar-prefetch
                          tables_ref, wslab_ref, pslab_ref,  # VMEM packed weights
                          out_ref,                           # VMEM output block
                          x_ref,                             # VMEM scratch (S, H)
                          *, seq, heads, head_dim, hidden, inter, layers, vocab):
    b = pl.program_id(0)
    H, I, S = hidden, inter, seq

    def vec(row, width):
        return pslab_ref[row:row + 1, 0:width]               # (1, width)

    def ln(x, g, beta, eps=1e-12):
        mu = jnp.mean(x, axis=-1, keepdims=True)
        var = jnp.mean((x - mu) ** 2, axis=-1, keepdims=True)
        return (x - mu) * jax.lax.rsqrt(var + eps) * g + beta

    # ---- embeddings: in-kernel gather from the fused table (word | pos+type0) ----
    for s in range(S):
        tid = ids_ref[b, s]                                  # SMEM scalar token id
        wrow = tables_ref[pl.ds(tid, 1), :]                  # (1, H) dynamic word row
        prow = tables_ref[vocab + s:vocab + s + 1, :]        # (1, H) pos+type row
        x_ref[s:s + 1, :] = wrow + prow
    x = ln(x_ref[...], vec(_ROW_EMB_LN_G, H), vec(_ROW_EMB_LN_B, H))       # (S, H)

    # ---- additive attention bias for this batch element (0 keep / -1e9 mask) ----
    lane = jax.lax.broadcasted_iota(jnp.int32, (1, S), 1)
    bias = jnp.zeros((1, S), jnp.float32)
    for s in range(S):
        mval = (1 - mask_ref[b, s]).astype(jnp.float32) * (-1e9)
        bias = bias + jnp.where(lane == s, mval, 0.0)

    # ---- transformer layers (fully unrolled; everything resident in VMEM) ----
    for l in range(layers):
        base = l * _PROWS_PER_LAYER

        # fused QKV projection: one (H, 3H) matmul; 1/sqrt(dh) pre-folded into Q cols.
        wqkv = wslab_ref[l, _WROW_QKV:_WROW_QKV + H, 0:3 * H]
        qkv = jnp.dot(x, wqkv, preferred_element_type=jnp.float32) + vec(base + _ROW_BQKV, 3 * H)

        # per-head attention; W_o folded per head -> no lane-dim concatenation.
        attn = None
        for h in range(heads):
            c0 = h * head_dim
            qh = qkv[:, c0:c0 + head_dim]
            kh = qkv[:, H + c0:H + c0 + head_dim]
            vh = qkv[:, 2 * H + c0:2 * H + c0 + head_dim]
            s_sc = jax.lax.dot_general(qh, kh, (((1,), (1,)), ((), ())),
                                       preferred_element_type=jnp.float32) + bias
            s_sc = s_sc - jnp.max(s_sc, axis=-1, keepdims=True)
            p = jnp.exp(s_sc)
            p = p * pl.reciprocal(jnp.sum(p, axis=-1, keepdims=True), approx=True)
            ctx_h = jnp.dot(p, vh, preferred_element_type=jnp.float32)     # (S, DH)
            wo_h = wslab_ref[l, _WROW_O + c0:_WROW_O + c0 + head_dim, 0:H]
            contrib = jnp.dot(ctx_h, wo_h, preferred_element_type=jnp.float32)
            attn = contrib if attn is None else attn + contrib
        attn = attn + vec(base + _ROW_BO, H)
        x = ln(attn + x, vec(base + _ROW_LN1G, H), vec(base + _ROW_LN1B, H))

        # feed forward (exact GELU) + fused residual LayerNorm.
        w1 = wslab_ref[l, _WROW_W1:_WROW_W1 + H, 0:I]
        w2 = wslab_ref[l, _WROW_W2:_WROW_W2 + I, 0:H]
        h1 = _gelu_exact(jnp.dot(x, w1, preferred_element_type=jnp.float32)
                         + vec(base + _ROW_B1, I))
        ffn = jnp.dot(h1, w2, preferred_element_type=jnp.float32) + vec(base + _ROW_B2, H)
        x = ln(ffn + x, vec(base + _ROW_LN2G, H), vec(base + _ROW_LN2B, H))

    # ---- GlobalMaxPool1D over seq (mask NOT applied — mirrors the PyTorch module),
    #      Dropout(0.3) identity at inference, fc into a lane-dense padded block ----
    pooled = jnp.max(x, axis=0, keepdims=True)                             # (1, H)
    fcw = pslab_ref[_ROW_FC_W:_ROW_FC_W + H, :]                            # (H, FC_PAD)
    logits = (jnp.dot(pooled, fcw, preferred_element_type=jnp.float32)
              + pslab_ref[_ROW_FC_B:_ROW_FC_B + 1, :])                     # (1, FC_PAD)
    out_ref[...] = jnp.broadcast_to(logits, (1, OUT_SUBLANES, FC_PAD))


def _const_spec(shape):
    nd = len(shape)
    return pl.BlockSpec(shape, lambda b, ids, msk, nd=nd: (0,) * nd)


# ----------------------------- parameters -----------------------------

def init_params(key):
    def nrm(k, shape):
        return jax.random.normal(k, shape, jnp.float32) * 0.02

    keys = iter(jax.random.split(key, 8 + NUM_LAYERS * 8))
    params = {
        "word_emb": nrm(next(keys), (VOCAB, HIDDEN)),
        "pos_emb": nrm(next(keys), (MAX_POS, HIDDEN)),
        "type_emb": nrm(next(keys), (2, HIDDEN)),
        "emb_ln_g": jnp.ones((HIDDEN,), jnp.float32),
        "emb_ln_b": jnp.zeros((HIDDEN,), jnp.float32),
        "fc_w": nrm(next(keys), (HIDDEN, OUTPUT_SIZE)),
        "fc_b": jnp.zeros((OUTPUT_SIZE,), jnp.float32),
        "layers": [],
    }
    for _ in range(NUM_LAYERS):
        layer = {
            "wq": nrm(next(keys), (HIDDEN, HIDDEN)), "bq": jnp.zeros((HIDDEN,), jnp.float32),
            "wk": nrm(next(keys), (HIDDEN, HIDDEN)), "bk": jnp.zeros((HIDDEN,), jnp.float32),
            "wv": nrm(next(keys), (HIDDEN, HIDDEN)), "bv": jnp.zeros((HIDDEN,), jnp.float32),
            "wo": nrm(next(keys), (HIDDEN, HIDDEN)), "bo": jnp.zeros((HIDDEN,), jnp.float32),
            "ln1_g": jnp.ones((HIDDEN,), jnp.float32), "ln1_b": jnp.zeros((HIDDEN,), jnp.float32),
            "w1": nrm(next(keys), (HIDDEN, INTERMEDIATE)), "b1": jnp.zeros((INTERMEDIATE,), jnp.float32),
            "w2": nrm(next(keys), (INTERMEDIATE, HIDDEN)), "b2": jnp.zeros((HIDDEN,), jnp.float32),
            "ln2_g": jnp.ones((HIDDEN,), jnp.float32), "ln2_b": jnp.zeros((HIDDEN,), jnp.float32),
        }
        params["layers"].append(layer)
    return params


def pack_params(params):
    """Pack all weights into 3 VMEM slabs; fold 1/sqrt(dh) into Q; pad fc to 128 lanes."""
    H, I = HIDDEN, INTERMEDIATE
    scale = 1.0 / math.sqrt(HEAD_DIM)

    # One gather table: rows [0,VOCAB) word embeddings, rows [VOCAB,VOCAB+MAX_POS)
    # position embedding + type-0 embedding (token_type_ids are all zero).
    tables = jnp.concatenate(
        [params["word_emb"], params["pos_emb"] + params["type_emb"][0][None, :]], axis=0)

    wslab = []
    for lyr in params["layers"]:
        blk = jnp.zeros((_WSLAB_ROWS, _WSLAB_COLS), jnp.float32)
        wqkv = jnp.concatenate([lyr["wq"] * scale, lyr["wk"], lyr["wv"]], axis=1)
        blk = blk.at[_WROW_QKV:_WROW_QKV + H, 0:3 * H].set(wqkv)
        blk = blk.at[_WROW_O:_WROW_O + H, 0:H].set(lyr["wo"])
        blk = blk.at[_WROW_W1:_WROW_W1 + H, 0:I].set(lyr["w1"])
        blk = blk.at[_WROW_W2:_WROW_W2 + I, 0:H].set(lyr["w2"])
        wslab.append(blk)
    wslab = jnp.stack(wslab, axis=0)                                       # (L, 160, 96)

    pslab = jnp.zeros((_PSLAB_ROWS, FC_PAD), jnp.float32)                  # (56, 128)
    for l, lyr in enumerate(params["layers"]):
        base = l * _PROWS_PER_LAYER
        bqkv = jnp.concatenate([lyr["bq"] * scale, lyr["bk"], lyr["bv"]])
        pslab = pslab.at[base + _ROW_BQKV, 0:3 * H].set(bqkv)
        pslab = pslab.at[base + _ROW_BO, 0:H].set(lyr["bo"])
        pslab = pslab.at[base + _ROW_LN1G, 0:H].set(lyr["ln1_g"])
        pslab = pslab.at[base + _ROW_LN1B, 0:H].set(lyr["ln1_b"])
        pslab = pslab.at[base + _ROW_B1, 0:I].set(lyr["b1"])
        pslab = pslab.at[base + _ROW_B2, 0:H].set(lyr["b2"])
        pslab = pslab.at[base + _ROW_LN2G, 0:H].set(lyr["ln2_g"])
        pslab = pslab.at[base + _ROW_LN2B, 0:H].set(lyr["ln2_b"])
    pslab = pslab.at[_ROW_EMB_LN_G, 0:H].set(params["emb_ln_g"])
    pslab = pslab.at[_ROW_EMB_LN_B, 0:H].set(params["emb_ln_b"])
    pslab = pslab.at[_ROW_FC_B, 0:OUTPUT_SIZE].set(params["fc_b"])
    pslab = pslab.at[_ROW_FC_W:_ROW_FC_W + H, 0:OUTPUT_SIZE].set(params["fc_w"])

    return {"tables": tables, "wslab": wslab, "pslab": pslab}


# ----------------------------- forward pass -----------------------------

@jax.jit
def emotion_model_forward(packed, input_ids, attention_mask):
    B, S = input_ids.shape
    assert S <= MAX_POS, "sequence length exceeds the positional-embedding table"

    kernel = functools.partial(
        _emotion_fused_kernel,
        seq=S, heads=NUM_HEADS, head_dim=HEAD_DIM, hidden=HIDDEN,
        inter=INTERMEDIATE, layers=NUM_LAYERS, vocab=VOCAB)

    grid_spec = pltpu.PrefetchScalarGridSpec(
        num_scalar_prefetch=2,                    # input_ids, attention_mask -> SMEM
        grid=(B,),                                # one batch element per grid step
        in_specs=[
            _const_spec(packed["tables"].shape),  # embedding table, resident in VMEM
            _const_spec(packed["wslab"].shape),   # big per-layer weights
            _const_spec(packed["pslab"].shape),   # biases / LN params / fc
        ],
        out_specs=pl.BlockSpec((1, OUT_SUBLANES, FC_PAD), lambda b, ids, msk: (b, 0, 0)),
        scratch_shapes=[pltpu.VMEM((S, HIDDEN), jnp.float32)],
    )

    out_padded = pl.pallas_call(
        kernel,
        out_shape=jax.ShapeDtypeStruct((B, OUT_SUBLANES, FC_PAD), jnp.float32),
        grid_spec=grid_spec,
        # < 0.5 MiB resident on all generations -> no vmem_limit / tiling tuning needed.
        # "parallel" lets v7x place one batch element on each of its two TensorCores.
        compiler_params=pltpu.CompilerParams(dimension_semantics=("parallel",)),
    )(input_ids.astype(jnp.int32), attention_mask.astype(jnp.int32),
      packed["tables"], packed["wslab"], packed["pslab"])

    return out_padded[:, 0, :OUTPUT_SIZE]


# ----------------------------- main -----------------------------

if __name__ == "__main__":
    key = jax.random.PRNGKey(0)
    pkey, ikey = jax.random.split(key)
    params = init_params(pkey)
    packed = pack_params(params)

    B, S = 2, 8
    input_ids = jax.random.randint(ikey, (B, S), 0, VOCAB, dtype=jnp.int32)
    attention_mask = jnp.ones((B, S), dtype=jnp.int32)

    logits = emotion_model_forward(packed, input_ids, attention_mask)
    logits = jax.block_until_ready(logits)
    assert logits.shape == (B, OUTPUT_SIZE)
    assert bool(jnp.all(jnp.isfinite(logits)))
    print("KERNEL_OK")
</pallas_src>

<mosaic_0001>
module attributes {stable_mosaic.version = 11 : i64} {
  func.func @_emotion_fused_kernel(%arg0: i32, %arg1: memref<2x8xi32, #tpu.memory_space<smem>>, %arg2: memref<2x8xi32, #tpu.memory_space<smem>>, %arg3: memref<116x32xf32, #tpu.memory_space<vmem>>, %arg4: memref<2x160x96xf32, #tpu.memory_space<vmem>>, %arg5: memref<56x128xf32, #tpu.memory_space<vmem>>, %arg6: memref<1x8x128xf32, #tpu.memory_space<vmem>>, %arg7: memref<8x32xf32, #tpu.memory_space<vmem>>) attributes {dimension_semantics = [#tpu.dimension_semantics<parallel>], iteration_bounds = array<i64: 2>, scalar_prefetch = 2 : i64, scratch_operands = 1 : i64, tpu.core_type = #tpu.core_type<tc>, window_params = [{pipeline_mode = #tpu.pipeline_mode<synchronous>, transform_indices = @transform_0, window_bounds = array<i64: 116, 32>}, {pipeline_mode = #tpu.pipeline_mode<synchronous>, transform_indices = @transform_1, window_bounds = array<i64: 2, 160, 96>}, {pipeline_mode = #tpu.pipeline_mode<synchronous>, transform_indices = @transform_2, window_bounds = array<i64: 56, 128>}, {transform_indices = @transform_3, window_bounds = array<i64: 1, 8, 128>}]} {
    %0 = arith.index_cast %arg0 : i32 to index
    %c0 = arith.constant 0 : index
    %1 = memref.load %arg1[%0, %c0] : memref<2x8xi32, #tpu.memory_space<smem>>
    %2 = arith.index_cast %1 : i32 to index
    %c0_0 = arith.constant 0 : index
    %3 = vector.load %arg3[%2, %c0_0] : memref<116x32xf32, #tpu.memory_space<vmem>>, vector<1x32xf32>
    %c100 = arith.constant 100 : index
    %c0_1 = arith.constant 0 : index
    %4 = vector.load %arg3[%c100, %c0_1] : memref<116x32xf32, #tpu.memory_space<vmem>>, vector<1x32xf32>
    %5 = arith.addf %3, %4 : vector<1x32xf32>
    %c0_2 = arith.constant 0 : index
    %c0_3 = arith.constant 0 : index
    %6 = vector.load %arg7[%c0_2, %c0_3] : memref<8x32xf32, #tpu.memory_space<vmem>>, vector<1x32xf32>
    tpu.vector_store %arg7[%c0_2, %c0_3], %5 {strides = array<i32>} : memref<8x32xf32, #tpu.memory_space<vmem>>, vector<1x32xf32>,
    %7 = arith.index_cast %arg0 : i32 to index
    %c1 = arith.constant 1 : index
    %8 = memref.load %arg1[%7, %c1] : memref<2x8xi32, #tpu.memory_space<smem>>
    %9 = arith.index_cast %8 : i32 to index
    %c0_4 = arith.constant 0 : index
    %10 = vector.load %arg3[%9, %c0_4] : memref<116x32xf32, #tpu.memory_space<vmem>>, vector<1x32xf32>
    %c101 = arith.constant 101 : index
    %c0_5 = arith.constant 0 : index
    %11 = vector.load %arg3[%c101, %c0_5] : memref<116x32xf32, #tpu.memory_space<vmem>>, vector<1x32xf32>
    %12 = arith.addf %10, %11 : vector<1x32xf32>
    %c1_6 = arith.constant 1 : index
    %c0_7 = arith.constant 0 : index
    %13 = vector.load %arg7[%c1_6, %c0_7] : memref<8x32xf32, #tpu.memory_space<vmem>>, vector<1x32xf32>
    tpu.vector_store %arg7[%c1_6, %c0_7], %12 {strides = array<i32>} : memref<8x32xf32, #tpu.memory_space<vmem>>, vector<1x32xf32>,
    %14 = arith.index_cast %arg0 : i32 to index
    %c2 = arith.constant 2 : index
    %15 = memref.load %arg1[%14, %c2] : memref<2x8xi32, #tpu.memory_space<smem>>
    %16 = arith.index_cast %15 : i32 to index
    %c0_8 = arith.constant 0 : index
    %17 = vector.load %arg3[%16, %c0_8] : memref<116x32xf32, #tpu.memory_space<vmem>>, vector<1x32xf32>
    %c102 = arith.constant 102 : index
    %c0_9 = arith.constant 0 : index
    %18 = vector.load %arg3[%c102, %c0_9] : memref<116x32xf32, #tpu.memory_space<vmem>>, vector<1x32xf32>
    %19 = arith.addf %17, %18 : vector<1x32xf32>
    %c2_10 = arith.constant 2 : index
    %c0_11 = arith.constant 0 : index
    %20 = vector.load %arg7[%c2_10, %c0_11] : memref<8x32xf32, #tpu.memory_space<vmem>>, vector<1x32xf32>
    tpu.vector_store %arg7[%c2_10, %c0_11], %19 {strides = array<i32>} : memref<8x32xf32, #tpu.memory_space<vmem>>, vector<1x32xf32>,
    %21 = arith.index_cast %arg0 : i32 to index
    %c3 = arith.constant 3 : index
    %22 = memref.load %arg1[%21, %c3] : memref<2x8xi32, #tpu.memory_space<smem>>
    %23 = arith.index_cast %22 : i32 to index
    %c0_12 = arith.constant 0 : index
    %24 = vector.load %arg3[%23, %c0_12] : memref<116x32xf32, #tpu.memory_space<vmem>>, vector<1x32xf32>
    %c103 = arith.constant 103 : index
    %c0_13 = arith.constant 0 : index
    %25 = vector.load %arg3[%c103, %c0_13] : memref<116x32xf32, #tpu.memory_space<vmem>>, vector<1x32xf32>
    %26 = arith.addf %24, %25 : vector<1x32xf32>
    %c3_14 = arith.constant 3 : index
    %c0_15 = arith.constant 0 : index
    %27 = vector.load %arg7[%c3_14, %c0_15] : memref<8x32xf32, #tpu.memory_space<vmem>>, vector<1x32xf32>
    tpu.vector_store %arg7[%c3_14, %c0_15], %26 {strides = array<i32>} : memref<8x32xf32, #tpu.memory_space<vmem>>, vector<1x32xf32>,
    %28 = arith.index_cast %arg0 : i32 to index
    %c4 = arith.constant 4 : index
    %29 = memref.load %arg1[%28, %c4] : memref<2x8xi32, #tpu.memory_space<smem>>
    %30 = arith.index_cast %29 : i32 to index
    %c0_16 = arith.constant 0 : index
    %31 = vector.load %arg3[%30, %c0_16] : memref<116x32xf32, #tpu.memory_space<vmem>>, vector<1x32xf32>
    %c104 = arith.constant 104 : index
    %c0_17 = arith.constant 0 : index
    %32 = vector.load %arg3[%c104, %c0_17] : memref<116x32xf32, #tpu.memory_space<vmem>>, vector<1x32xf32>
    %33 = arith.addf %31, %32 : vector<1x32xf32>
    %c4_18 = arith.constant 4 : index
    %c0_19 = arith.constant 0 : index
    %34 = vector.load %arg7[%c4_18, %c0_19] : memref<8x32xf32, #tpu.memory_space<vmem>>, vector<1x32xf32>
    tpu.vector_store %arg7[%c4_18, %c0_19], %33 {strides = array<i32>} : memref<8x32xf32, #tpu.memory_space<vmem>>, vector<1x32xf32>,
    %35 = arith.index_cast %arg0 : i32 to index
    %c5 = arith.constant 5 : index
    %36 = memref.load %arg1[%35, %c5] : memref<2x8xi32, #tpu.memory_space<smem>>
    %37 = arith.index_cast %36 : i32 to index
    %c0_20 = arith.constant 0 : index
    %38 = vector.load %arg3[%37, %c0_20] : memref<116x32xf32, #tpu.memory_space<vmem>>, vector<1x32xf32>
    %c105 = arith.constant 105 : index
    %c0_21 = arith.constant 0 : index
    %39 = vector.load %arg3[%c105, %c0_21] : memref<116x32xf32, #tpu.memory_space<vmem>>, vector<1x32xf32>
    %40 = arith.addf %38, %39 : vector<1x32xf32>
    %c5_22 = arith.constant 5 : index
    %c0_23 = arith.constant 0 : index
    %41 = vector.load %arg7[%c5_22, %c0_23] : memref<8x32xf32, #tpu.memory_space<vmem>>, vector<1x32xf32>
    tpu.vector_store %arg7[%c5_22, %c0_23], %40 {strides = array<i32>} : memref<8x32xf32, #tpu.memory_space<vmem>>, vector<1x32xf32>,
    %42 = arith.index_cast %arg0 : i32 to index
    %c6 = arith.constant 6 : index
    %43 = memref.load %arg1[%42, %c6] : memref<2x8xi32, #tpu.memory_space<smem>>
    %44 = arith.index_cast %43 : i32 to index
    %c0_24 = arith.constant 0 : index
    %45 = vector.load %arg3[%44, %c0_24] : memref<116x32xf32, #tpu.memory_space<vmem>>, vector<1x32xf32>
    %c106 = arith.constant 106 : index
    %c0_25 = arith.constant 0 : index
    %46 = vector.load %arg3[%c106, %c0_25] : memref<116x32xf32, #tpu.memory_space<vmem>>, vector<1x32xf32>
    %47 = arith.addf %45, %46 : vector<1x32xf32>
    %c6_26 = arith.constant 6 : index
    %c0_27 = arith.constant 0 : index
    %48 = vector.load %arg7[%c6_26, %c0_27] : memref<8x32xf32, #tpu.memory_space<vmem>>, vector<1x32xf32>
    tpu.vector_store %arg7[%c6_26, %c0_27], %47 {strides = array<i32>} : memref<8x32xf32, #tpu.memory_space<vmem>>, vector<1x32xf32>,
    %49 = arith.index_cast %arg0 : i32 to index
    %c7 = arith.constant 7 : index
    %50 = memref.load %arg1[%49, %c7] : memref<2x8xi32, #tpu.memory_space<smem>>
    %51 = arith.index_cast %50 : i32 to index
    %c0_28 = arith.constant 0 : index
    %52 = vector.load %arg3[%51, %c0_28] : memref<116x32xf32, #tpu.memory_space<vmem>>, vector<1x32xf32>
    %c107 = arith.constant 107 : index
    %c0_29 = arith.constant 0 : index
    %53 = vector.load %arg3[%c107, %c0_29] : memref<116x32xf32, #tpu.memory_space<vmem>>, vector<1x32xf32>
    %54 = arith.addf %52, %53 : vector<1x32xf32>
    %c7_30 = arith.constant 7 : index
    %c0_31 = arith.constant 0 : index
    %55 = vector.load %arg7[%c7_30, %c0_31] : memref<8x32xf32, #tpu.memory_space<vmem>>, vector<1x32xf32>
    tpu.vector_store %arg7[%c7_30, %c0_31], %54 {strides = array<i32>} : memref<8x32xf32, #tpu.memory_space<vmem>>, vector<1x32xf32>,
    %c0_32 = arith.constant 0 : index
    %c0_33 = arith.constant 0 : index
    %56 = vector.load %arg7[%c0_32, %c0_33] : memref<8x32xf32, #tpu.memory_space<vmem>>, vector<8x32xf32>
    %c16 = arith.constant 16 : index
    %c0_34 = arith.constant 0 : index
    %57 = vector.load %arg5[%c16, %c0_34] : memref<56x128xf32, #tpu.memory_space<vmem>>, vector<1x32xf32>
    %c17 = arith.constant 17 : index
    %c0_35 = arith.constant 0 : index
    %58 = vector.load %arg5[%c17, %c0_35] : memref<56x128xf32, #tpu.memory_space<vmem>>, vector<1x32xf32>
    %cst = arith.constant dense<0.000000e+00> : vector<8xf32>
    %59 = vector.multi_reduction <add>, %56, %cst [1] : vector<8x32xf32> to vector<8xf32>
    %60 = vector.shape_cast %59 : vector<8xf32> to vector<8x1xf32>
    %cst_36 = arith.constant 3.200000e+01 : f32
    %61 = vector.broadcast %cst_36 : f32 to vector<8x1xf32>
    %62 = arith.divf %60, %61 : vector<8x1xf32>
    %63 = vector.broadcast %62 : vector<8x1xf32> to vector<8x32xf32>
    %64 = arith.subf %56, %63 : vector<8x32xf32>
    %65 = arith.mulf %64, %64 : vector<8x32xf32>
    %cst_37 = arith.constant dense<0.000000e+00> : vector<8xf32>
    %66 = vector.multi_reduction <add>, %65, %cst_37 [1] : vector<8x32xf32> to vector<8xf32>
    %67 = vector.shape_cast %66 : vector<8xf32> to vector<8x1xf32>
    %cst_38 = arith.constant 3.200000e+01 : f32
    %68 = vector.broadcast %cst_38 : f32 to vector<8x1xf32>
    %69 = arith.divf %67, %68 : vector<8x1xf32>
    %70 = vector.broadcast %62 : vector<8x1xf32> to vector<8x32xf32>
    %71 = arith.subf %56, %70 : vector<8x32xf32>
    %cst_39 = arith.constant 9.99999996E-13 : f32
    %72 = vector.broadcast %cst_39 : f32 to vector<8x1xf32>
    %73 = arith.addf %69, %72 : vector<8x1xf32>
    %74 = math.rsqrt %73 : vector<8x1xf32>
    %75 = vector.broadcast %74 : vector<8x1xf32> to vector<8x32xf32>
    %76 = arith.mulf %71, %75 : vector<8x32xf32>
    %77 = vector.broadcast %57 : vector<1x32xf32> to vector<8x32xf32>
    %78 = arith.mulf %76, %77 : vector<8x32xf32>
    %79 = vector.broadcast %58 : vector<1x32xf32> to vector<8x32xf32>
    %80 = arith.addf %78, %79 : vector<8x32xf32>
    %81 = tpu.iota {dimensions = array<i32: 1>} : vector<1x8xi32>
    %cst_40 = arith.constant 0.000000e+00 : f32
    %82 = vector.broadcast %cst_40 : f32 to vector<1x8xf32>
    %83 = arith.index_cast %arg0 : i32 to index
    %c0_41 = arith.constant 0 : index
    %84 = memref.load %arg2[%83, %c0_41] : memref<2x8xi32, #tpu.memory_space<smem>>
    %c1_i32 = arith.constant 1 : i32
    %85 = arith.subi %c1_i32, %84 : i32
    %86 = arith.sitofp %85 : i32 to f32
    %cst_42 = arith.constant -1.000000e+09 : f32
    %87 = arith.mulf %86, %cst_42 : f32
    %c0_i32 = arith.constant 0 : i32
    %88 = vector.broadcast %c0_i32 : i32 to vector<1x8xi32>
    %89 = arith.cmpi eq, %81, %88 : vector<1x8xi32>
    %cst_43 = arith.constant 0.000000e+00 : f32
    %90 = vector.broadcast %87 : f32 to vector<1x8xf32>
    %91 = vector.broadcast %cst_43 : f32 to vector<1x8xf32>
    %92 = arith.select %89, %90, %91 : vector<1x8xi1>, vector<1x8xf32>
    %93 = arith.addf %82, %92 : vector<1x8xf32>
    %94 = arith.index_cast %arg0 : i32 to index
    %c1_44 = arith.constant 1 : index
    %95 = memref.load %arg2[%94, %c1_44] : memref<2x8xi32, #tpu.memory_space<smem>>
    %c1_i32_45 = arith.constant 1 : i32
    %96 = arith.subi %c1_i32_45, %95 : i32
    %97 = arith.sitofp %96 : i32 to f32
    %cst_46 = arith.constant -1.000000e+09 : f32
    %98 = arith.mulf %97, %cst_46 : f32
    %c1_i32_47 = arith.constant 1 : i32
    %99 = vector.broadcast %c1_i32_47 : i32 to vector<1x8xi32>
    %100 = arith.cmpi eq, %81, %99 : vector<1x8xi32>
    %cst_48 = arith.constant 0.000000e+00 : f32
    %101 = vector.broadcast %98 : f32 to vector<1x8xf32>
    %102 = vector.broadcast %cst_48 : f32 to vector<1x8xf32>
    %103 = arith.select %100, %101, %102 : vector<1x8xi1>, vector<1x8xf32>
    %104 = arith.addf %93, %103 : vector<1x8xf32>
    %105 = arith.index_cast %arg0 : i32 to index
    %c2_49 = arith.constant 2 : index
    %106 = memref.load %arg2[%105, %c2_49] : memref<2x8xi32, #tpu.memory_space<smem>>
    %c1_i32_50 = arith.constant 1 : i32
    %107 = arith.subi %c1_i32_50, %106 : i32
    %108 = arith.sitofp %107 : i32 to f32
    %cst_51 = arith.constant -1.000000e+09 : f32
    %109 = arith.mulf %108, %cst_51 : f32
    %c2_i32 = arith.constant 2 : i32
    %110 = vector.broadcast %c2_i32 : i32 to vector<1x8xi32>
    %111 = arith.cmpi eq, %81, %110 : vector<1x8xi32>
    %cst_52 = arith.constant 0.000000e+00 : f32
    %112 = vector.broadcast %109 : f32 to vector<1x8xf32>
    %113 = vector.broadcast %cst_52 : f32 to vector<1x8xf32>
    %114 = arith.select %111, %112, %113 : vector<1x8xi1>, vector<1x8xf32>
    %115 = arith.addf %104, %114 : vector<1x8xf32>
    %116 = arith.index_cast %arg0 : i32 to index
    %c3_53 = arith.constant 3 : index
    %117 = memref.load %arg2[%116, %c3_53] : memref<2x8xi32, #tpu.memory_space<smem>>
    %c1_i32_54 = arith.constant 1 : i32
    %118 = arith.subi %c1_i32_54, %117 : i32
    %119 = arith.sitofp %118 : i32 to f32
    %cst_55 = arith.constant -1.000000e+09 : f32
    %120 = arith.mulf %119, %cst_55 : f32
    %c3_i32 = arith.constant 3 : i32
    %121 = vector.broadcast %c3_i32 : i32 to vector<1x8xi32>
    %122 = arith.cmpi eq, %81, %121 : vector<1x8xi32>
    %cst_56 = arith.constant 0.000000e+00 : f32
    %123 = vector.broadcast %120 : f32 to vector<1x8xf32>
    %124 = vector.broadcast %cst_56 : f32 to vector<1x8xf32>
    %125 = arith.select %122, %123, %124 : vector<1x8xi1>, vector<1x8xf32>
    %126 = arith.addf %115, %125 : vector<1x8xf32>
    %127 = arith.index_cast %arg0 : i32 to index
    %c4_57 = arith.constant 4 : index
    %128 = memref.load %arg2[%127, %c4_57] : memref<2x8xi32, #tpu.memory_space<smem>>
    %c1_i32_58 = arith.constant 1 : i32
    %129 = arith.subi %c1_i32_58, %128 : i32
    %130 = arith.sitofp %129 : i32 to f32
    %cst_59 = arith.constant -1.000000e+09 : f32
    %131 = arith.mulf %130, %cst_59 : f32
    %c4_i32 = arith.constant 4 : i32
    %132 = vector.broadcast %c4_i32 : i32 to vector<1x8xi32>
    %133 = arith.cmpi eq, %81, %132 : vector<1x8xi32>
    %cst_60 = arith.constant 0.000000e+00 : f32
    %134 = vector.broadcast %131 : f32 to vector<1x8xf32>
    %135 = vector.broadcast %cst_60 : f32 to vector<1x8xf32>
    %136 = arith.select %133, %134, %135 : vector<1x8xi1>, vector<1x8xf32>
    %137 = arith.addf %126, %136 : vector<1x8xf32>
    %138 = arith.index_cast %arg0 : i32 to index
    %c5_61 = arith.constant 5 : index
    %139 = memref.load %arg2[%138, %c5_61] : memref<2x8xi32, #tpu.memory_space<smem>>
    %c1_i32_62 = arith.constant 1 : i32
    %140 = arith.subi %c1_i32_62, %139 : i32
    %141 = arith.sitofp %140 : i32 to f32
    %cst_63 = arith.constant -1.000000e+09 : f32
    %142 = arith.mulf %141, %cst_63 : f32
    %c5_i32 = arith.constant 5 : i32
    %143 = vector.broadcast %c5_i32 : i32 to vector<1x8xi32>
    %144 = arith.cmpi eq, %81, %143 : vector<1x8xi32>
    %cst_64 = arith.constant 0.000000e+00 : f32
    %145 = vector.broadcast %142 : f32 to vector<1x8xf32>
    %146 = vector.broadcast %cst_64 : f32 to vector<1x8xf32>
    %147 = arith.select %144, %145, %146 : vector<1x8xi1>, vector<1x8xf32>
    %148 = arith.addf %137, %147 : vector<1x8xf32>
    %149 = arith.index_cast %arg0 : i32 to index
    %c6_65 = arith.constant 6 : index
    %150 = memref.load %arg2[%149, %c6_65] : memref<2x8xi32, #tpu.memory_space<smem>>
    %c1_i32_66 = arith.constant 1 : i32
    %151 = arith.subi %c1_i32_66, %150 : i32
    %152 = arith.sitofp %151 : i32 to f32
    %cst_67 = arith.constant -1.000000e+09 : f32
    %153 = arith.mulf %152, %cst_67 : f32
    %c6_i32 = arith.constant 6 : i32
    %154 = vector.broadcast %c6_i32 : i32 to vector<1x8xi32>
    %155 = arith.cmpi eq, %81, %154 : vector<1x8xi32>
    %cst_68 = arith.constant 0.000000e+00 : f32
    %156 = vector.broadcast %153 : f32 to vector<1x8xf32>
    %157 = vector.broadcast %cst_68 : f32 to vector<1x8xf32>
    %158 = arith.select %155, %156, %157 : vector<1x8xi1>, vector<1x8xf32>
    %159 = arith.addf %148, %158 : vector<1x8xf32>
    %160 = arith.index_cast %arg0 : i32 to index
    %c7_69 = arith.constant 7 : index
    %161 = memref.load %arg2[%160, %c7_69] : memref<2x8xi32, #tpu.memory_space<smem>>
    %c1_i32_70 = arith.constant 1 : i32
    %162 = arith.subi %c1_i32_70, %161 : i32
    %163 = arith.sitofp %162 : i32 to f32
    %cst_71 = arith.constant -1.000000e+09 : f32
    %164 = arith.mulf %163, %cst_71 : f32
    %c7_i32 = arith.constant 7 : i32
    %165 = vector.broadcast %c7_i32 : i32 to vector<1x8xi32>
    %166 = arith.cmpi eq, %81, %165 : vector<1x8xi32>
    %cst_72 = arith.constant 0.000000e+00 : f32
    %167 = vector.broadcast %164 : f32 to vector<1x8xf32>
    %168 = vector.broadcast %cst_72 : f32 to vector<1x8xf32>
    %169 = arith.select %166, %167, %168 : vector<1x8xi1>, vector<1x8xf32>
    %170 = arith.addf %159, %169 : vector<1x8xf32>
    %c0_73 = arith.constant 0 : index
    %c0_74 = arith.constant 0 : index
    %c0_75 = arith.constant 0 : index
    %171 = vector.load %arg4[%c0_73, %c0_74, %c0_75] : memref<2x160x96xf32, #tpu.memory_space<vmem>>, vector<1x32x96xf32>
    %172 = vector.shape_cast %171 : vector<1x32x96xf32> to vector<32x96xf32>
    %cst_76 = arith.constant dense<0.000000e+00> : vector<8x96xf32>
    %173 = tpu.matmul %80, %172, %cst_76 {dimension_numbers = #tpu.dot_dimension_numbers<[1], [0], [0], [1], [0, 0, 1, 1], [], []>} : vector<8x32xf32>, vector<32x96xf32>, vector<8x96xf32> -> vector<8x96xf32>
    %c0_77 = arith.constant 0 : index
    %c0_78 = arith.constant 0 : index
    %174 = vector.load %arg5[%c0_77, %c0_78] : memref<56x128xf32, #tpu.memory_space<vmem>>, vector<1x96xf32>
    %175 = vector.broadcast %174 : vector<1x96xf32> to vector<8x96xf32>
    %176 = arith.addf %173, %175 : vector<8x96xf32>
    %177 = vector.extract_strided_slice %176 {offsets = [0, 0], sizes = [8, 16], strides = [1, 1]} : vector<8x96xf32> to vector<8x16xf32>
    %178 = vector.extract_strided_slice %176 {offsets = [0, 32], sizes = [8, 16], strides = [1, 1]} : vector<8x96xf32> to vector<8x16xf32>
    %179 = vector.extract_strided_slice %176 {offsets = [0, 64], sizes = [8, 16], strides = [1, 1]} : vector<8x96xf32> to vector<8x16xf32>
    %cst_79 = arith.constant dense<0.000000e+00> : vector<8x8xf32>
    %180 = tpu.matmul %177, %178, %cst_79 {dimension_numbers = #tpu.dot_dimension_numbers<[1], [1], [0], [0], [0, 0, 1, 0], [], []>} : vector<8x16xf32>, vector<8x16xf32>, vector<8x8xf32> -> vector<8x8xf32>
    %181 = vector.broadcast %170 : vector<1x8xf32> to vector<8x8xf32>
    %182 = arith.addf %180, %181 : vector<8x8xf32>
    %cst_80 = arith.constant dense<0xFF800000> : vector<8xf32>
    %183 = vector.multi_reduction <maximumf>, %182, %cst_80 [1] : vector<8x8xf32> to vector<8xf32>
    %184 = vector.shape_cast %183 : vector<8xf32> to vector<8x1xf32>
    %185 = vector.broadcast %184 : vector<8x1xf32> to vector<8x8xf32>
    %186 = arith.subf %182, %185 : vector<8x8xf32>
    %187 = math.exp %186 : vector<8x8xf32>
    %cst_81 = arith.constant dense<0.000000e+00> : vector<8xf32>
    %188 = vector.multi_reduction <add>, %187, %cst_81 [1] : vector<8x8xf32> to vector<8xf32>
    %189 = vector.shape_cast %188 : vector<8xf32> to vector<8x1xf32>
    %190 = tpu.reciprocal %189 {approx = true} : vector<8x1xf32> -> vector<8x1xf32>
    %191 = vector.broadcast %190 : vector<8x1xf32> to vector<8x8xf32>
    %192 = arith.mulf %187, %191 : vector<8x8xf32>
    %cst_82 = arith.constant dense<0.000000e+00> : vector<8x16xf32>
    %193 = tpu.matmul %192, %179, %cst_82 {dimension_numbers = #tpu.dot_dimension_numbers<[1], [0], [0], [1], [0, 0, 1, 1], [], []>} : vector<8x8xf32>, vector<8x16xf32>, vector<8x16xf32> -> vector<8x16xf32>
    %c0_83 = arith.constant 0 : index
    %c32 = arith.constant 32 : index
    %c0_84 = arith.constant 0 : index
    %194 = vector.load %arg4[%c0_83, %c32, %c0_84] : memref<2x160x96xf32, #tpu.memory_space<vmem>>, vector<1x16x32xf32>
    %195 = vector.shape_cast %194 : vector<1x16x32xf32> to vector<16x32xf32>
    %cst_85 = arith.constant dense<0.000000e+00> : vector<8x32xf32>
    %196 = tpu.matmul %193, %195, %cst_85 {dimension_numbers = #tpu.dot_dimension_numbers<[1], [0], [0], [1], [0, 0, 1, 1], [], []>} : vector<8x16xf32>, vector<16x32xf32>, vector<8x32xf32> -> vector<8x32xf32>
    %197 = vector.extract_strided_slice %176 {offsets = [0, 16], sizes = [8, 16], strides = [1, 1]} : vector<8x96xf32> to vector<8x16xf32>
    %198 = vector.extract_strided_slice %176 {offsets = [0, 48], sizes = [8, 16], strides = [1, 1]} : vector<8x96xf32> to vector<8x16xf32>
    %199 = vector.extract_strided_slice %176 {offsets = [0, 80], sizes = [8, 16], strides = [1, 1]} : vector<8x96xf32> to vector<8x16xf32>
    %cst_86 = arith.constant dense<0.000000e+00> : vector<8x8xf32>
    %200 = tpu.matmul %197, %198, %cst_86 {dimension_numbers = #tpu.dot_dimension_numbers<[1], [1], [0], [0], [0, 0, 1, 0], [], []>} : vector<8x16xf32>, vector<8x16xf32>, vector<8x8xf32> -> vector<8x8xf32>
    %201 = vector.broadcast %170 : vector<1x8xf32> to vector<8x8xf32>
    %202 = arith.addf %200, %201 : vector<8x8xf32>
    %cst_87 = arith.constant dense<0xFF800000> : vector<8xf32>
    %203 = vector.multi_reduction <maximumf>, %202, %cst_87 [1] : vector<8x8xf32> to vector<8xf32>
    %204 = vector.shape_cast %203 : vector<8xf32> to vector<8x1xf32>
    %205 = vector.broadcast %204 : vector<8x1xf32> to vector<8x8xf32>
    %206 = arith.subf %202, %205 : vector<8x8xf32>
    %207 = math.exp %206 : vector<8x8xf32>
    %cst_88 = arith.constant dense<0.000000e+00> : vector<8xf32>
    %208 = vector.multi_reduction <add>, %207, %cst_88 [1] : vector<8x8xf32> to vector<8xf32>
    %209 = vector.shape_cast %208 : vector<8xf32> to vector<8x1xf32>
    %210 = tpu.reciprocal %209 {approx = true} : vector<8x1xf32> -> vector<8x1xf32>
    %211 = vector.broadcast %210 : vector<8x1xf32> to vector<8x8xf32>
    %212 = arith.mulf %207, %211 : vector<8x8xf32>
    %cst_89 = arith.constant dense<0.000000e+00> : vector<8x16xf32>
    %213 = tpu.matmul %212, %199, %cst_89 {dimension_numbers = #tpu.dot_dimension_numbers<[1], [0], [0], [1], [0, 0, 1, 1], [], []>} : vector<8x8xf32>, vector<8x16xf32>, vector<8x16xf32> -> vector<8x16xf32>
    %c0_90 = arith.constant 0 : index
    %c48 = arith.constant 48 : index
    %c0_91 = arith.constant 0 : index
    %214 = vector.load %arg4[%c0_90, %c48, %c0_91] : memref<2x160x96xf32, #tpu.memory_space<vmem>>, vector<1x16x32xf32>
    %215 = vector.shape_cast %214 : vector<1x16x32xf32> to vector<16x32xf32>
    %cst_92 = arith.constant dense<0.000000e+00> : vector<8x32xf32>
    %216 = tpu.matmul %213, %215, %cst_92 {dimension_numbers = #tpu.dot_dimension_numbers<[1], [0], [0], [1], [0, 0, 1, 1], [], []>} : vector<8x16xf32>, vector<16x32xf32>, vector<8x32xf32> -> vector<8x32xf32>
    %217 = arith.addf %196, %216 : vector<8x32xf32>
    %c1_93 = arith.constant 1 : index
    %c0_94 = arith.constant 0 : index
    %218 = vector.load %arg5[%c1_93, %c0_94] : memref<56x128xf32, #tpu.memory_space<vmem>>, vector<1x32xf32>
    %219 = vector.broadcast %218 : vector<1x32xf32> to vector<8x32xf32>
    %220 = arith.addf %217, %219 : vector<8x32xf32>
    %221 = arith.addf %220, %80 : vector<8x32xf32>
    %c2_95 = arith.constant 2 : index
    %c0_96 = arith.constant 0 : index
    %222 = vector.load %arg5[%c2_95, %c0_96] : memref<56x128xf32, #tpu.memory_space<vmem>>, vector<1x32xf32>
    %c3_97 = arith.constant 3 : index
    %c0_98 = arith.constant 0 : index
    %223 = vector.load %arg5[%c3_97, %c0_98] : memref<56x128xf32, #tpu.memory_space<vmem>>, vector<1x32xf32>
    %cst_99 = arith.constant dense<0.000000e+00> : vector<8xf32>
    %224 = vector.multi_reduction <add>, %221, %cst_99 [1] : vector<8x32xf32> to vector<8xf32>
    %225 = vector.shape_cast %224 : vector<8xf32> to vector<8x1xf32>
    %cst_100 = arith.constant 3.200000e+01 : f32
    %226 = vector.broadcast %cst_100 : f32 to vector<8x1xf32>
    %227 = arith.divf %225, %226 : vector<8x1xf32>
    %228 = vector.broadcast %227 : vector<8x1xf32> to vector<8x32xf32>
    %229 = arith.subf %221, %228 : vector<8x32xf32>
    %230 = arith.mulf %229, %229 : vector<8x32xf32>
    %cst_101 = arith.constant dense<0.000000e+00> : vector<8xf32>
    %231 = vector.multi_reduction <add>, %230, %cst_101 [1] : vector<8x32xf32> to vector<8xf32>
    %232 = vector.shape_cast %231 : vector<8xf32> to vector<8x1xf32>
    %cst_102 = arith.constant 3.200000e+01 : f32
    %233 = vector.broadcast %cst_102 : f32 to vector<8x1xf32>
    %234 = arith.divf %232, %233 : vector<8x1xf32>
    %235 = vector.broadcast %227 : vector<8x1xf32> to vector<8x32xf32>
    %236 = arith.subf %221, %235 : vector<8x32xf32>
    %cst_103 = arith.constant 9.99999996E-13 : f32
    %237 = vector.broadcast %cst_103 : f32 to vector<8x1xf32>
    %238 = arith.addf %234, %237 : vector<8x1xf32>
    %239 = math.rsqrt %238 : vector<8x1xf32>
    %240 = vector.broadcast %239 : vector<8x1xf32> to vector<8x32xf32>
    %241 = arith.mulf %236, %240 : vector<8x32xf32>
    %242 = vector.broadcast %222 : vector<1x32xf32> to vector<8x32xf32>
    %243 = arith.mulf %241, %242 : vector<8x32xf32>
    %244 = vector.broadcast %223 : vector<1x32xf32> to vector<8x32xf32>
    %245 = arith.addf %243, %244 : vector<8x32xf32>
    %c0_104 = arith.constant 0 : index
    %c64 = arith.constant 64 : index
    %c0_105 = arith.constant 0 : index
    %246 = vector.load %arg4[%c0_104, %c64, %c0_105] : memref<2x160x96xf32, #tpu.memory_space<vmem>>, vector<1x32x64xf32>
    %247 = vector.shape_cast %246 : vector<1x32x64xf32> to vector<32x64xf32>
    %c0_106 = arith.constant 0 : index
    %c96 = arith.constant 96 : index
    %c0_107 = arith.constant 0 : index
    %248 = vector.load %arg4[%c0_106, %c96, %c0_107] : memref<2x160x96xf32, #tpu.memory_space<vmem>>, vector<1x64x32xf32>
    %249 = vector.shape_cast %248 : vector<1x64x32xf32> to vector<64x32xf32>
    %cst_108 = arith.constant dense<0.000000e+00> : vector<8x64xf32>
    %250 = tpu.matmul %245, %247, %cst_108 {dimension_numbers = #tpu.dot_dimension_numbers<[1], [0], [0], [1], [0, 0, 1, 1], [], []>} : vector<8x32xf32>, vector<32x64xf32>, vector<8x64xf32> -> vector<8x64xf32>
    %c4_109 = arith.constant 4 : index
    %c0_110 = arith.constant 0 : index
    %251 = vector.load %arg5[%c4_109, %c0_110] : memref<56x128xf32, #tpu.memory_space<vmem>>, vector<1x64xf32>
    %252 = vector.broadcast %251 : vector<1x64xf32> to vector<8x64xf32>
    %253 = arith.addf %250, %252 : vector<8x64xf32>
    %cst_111 = arith.constant 5.000000e-01 : f32
    %254 = vector.broadcast %cst_111 : f32 to vector<8x64xf32>
    %255 = arith.mulf %254, %253 : vector<8x64xf32>
    %cst_112 = arith.constant 0.707106769 : f32
    %256 = vector.broadcast %cst_112 : f32 to vector<8x64xf32>
    %257 = arith.mulf %253, %256 : vector<8x64xf32>
    %cst_113 = arith.constant 0.000000e+00 : f32
    %258 = vector.broadcast %cst_113 : f32 to vector<8x64xf32>
    %259 = arith.cmpf olt, %257, %258 : vector<8x64xf32>
    %cst_114 = arith.constant -1.000000e+00 : f32
    %cst_115 = arith.constant 1.000000e+00 : f32
    %260 = vector.broadcast %cst_114 : f32 to vector<8x64xf32>
    %261 = vector.broadcast %cst_115 : f32 to vector<8x64xf32>
    %262 = arith.select %259, %260, %261 : vector<8x64xi1>, vector<8x64xf32>
    %263 = math.absf %257 : vector<8x64xf32>
    %cst_116 = arith.constant 0.327591091 : f32
    %264 = vector.broadcast %cst_116 : f32 to vector<8x64xf32>
    %265 = arith.mulf %264, %263 : vector<8x64xf32>
    %cst_117 = arith.constant 1.000000e+00 : f32
    %266 = vector.broadcast %cst_117 : f32 to vector<8x64xf32>
    %267 = arith.addf %266, %265 : vector<8x64xf32>
    %268 = tpu.reciprocal %267 {approx = true} : vector<8x64xf32> -> vector<8x64xf32>
    %cst_118 = arith.constant 1.06140542 : f32
    %269 = vector.broadcast %cst_118 : f32 to vector<8x64xf32>
    %270 = arith.mulf %268, %269 : vector<8x64xf32>
    %cst_119 = arith.constant -1.45315206 : f32
    %271 = vector.broadcast %cst_119 : f32 to vector<8x64xf32>
    %272 = arith.addf %271, %270 : vector<8x64xf32>
    %273 = arith.mulf %268, %272 : vector<8x64xf32>
    %cst_120 = arith.constant 1.42141378 : f32
    %274 = vector.broadcast %cst_120 : f32 to vector<8x64xf32>
    %275 = arith.addf %274, %273 : vector<8x64xf32>
    %276 = arith.mulf %268, %275 : vector<8x64xf32>
    %cst_121 = arith.constant -0.284496725 : f32
    %277 = vector.broadcast %cst_121 : f32 to vector<8x64xf32>
    %278 = arith.addf %277, %276 : vector<8x64xf32>
    %279 = arith.mulf %268, %278 : vector<8x64xf32>
    %cst_122 = arith.constant 0.254829586 : f32
    %280 = vector.broadcast %cst_122 : f32 to vector<8x64xf32>
    %281 = arith.addf %280, %279 : vector<8x64xf32>
    %282 = arith.mulf %268, %281 : vector<8x64xf32>
    %cst_123 = arith.constant 0.000000e+00 : f32
    %283 = vector.broadcast %cst_123 : f32 to vector<8x64xf32>
    %284 = arith.subf %283, %263 : vector<8x64xf32>
    %285 = arith.mulf %284, %263 : vector<8x64xf32>
    %286 = math.exp %285 : vector<8x64xf32>
    %287 = arith.mulf %282, %286 : vector<8x64xf32>
    %cst_124 = arith.constant 1.000000e+00 : f32
    %288 = vector.broadcast %cst_124 : f32 to vector<8x64xf32>
    %289 = arith.subf %288, %287 : vector<8x64xf32>
    %290 = arith.mulf %262, %289 : vector<8x64xf32>
    %cst_125 = arith.constant 1.000000e+00 : f32
    %291 = vector.broadcast %cst_125 : f32 to vector<8x64xf32>
    %292 = arith.addf %291, %290 : vector<8x64xf32>
    %293 = arith.mulf %255, %292 : vector<8x64xf32>
    %cst_126 = arith.constant dense<0.000000e+00> : vector<8x32xf32>
    %294 = tpu.matmul %293, %249, %cst_126 {dimension_numbers = #tpu.dot_dimension_numbers<[1], [0], [0], [1], [0, 0, 1, 1], [], []>} : vector<8x64xf32>, vector<64x32xf32>, vector<8x32xf32> -> vector<8x32xf32>
    %c5_127 = arith.constant 5 : index
    %c0_128 = arith.constant 0 : index
    %295 = vector.load %arg5[%c5_127, %c0_128] : memref<56x128xf32, #tpu.memory_space<vmem>>, vector<1x32xf32>
    %296 = vector.broadcast %295 : vector<1x32xf32> to vector<8x32xf32>
    %297 = arith.addf %294, %296 : vector<8x32xf32>
    %298 = arith.addf %297, %245 : vector<8x32xf32>
    %c6_129 = arith.constant 6 : index
    %c0_130 = arith.constant 0 : index
    %299 = vector.load %arg5[%c6_129, %c0_130] : memref<56x128xf32, #tpu.memory_space<vmem>>, vector<1x32xf32>
    %c7_131 = arith.constant 7 : index
    %c0_132 = arith.constant 0 : index
    %300 = vector.load %arg5[%c7_131, %c0_132] : memref<56x128xf32, #tpu.memory_space<vmem>>, vector<1x32xf32>
    %cst_133 = arith.constant dense<0.000000e+00> : vector<8xf32>
    %301 = vector.multi_reduction <add>, %298, %cst_133 [1] : vector<8x32xf32> to vector<8xf32>
    %302 = vector.shape_cast %301 : vector<8xf32> to vector<8x1xf32>
    %cst_134 = arith.constant 3.200000e+01 : f32
    %303 = vector.broadcast %cst_134 : f32 to vector<8x1xf32>
    %304 = arith.divf %302, %303 : vector<8x1xf32>
    %305 = vector.broadcast %304 : vector<8x1xf32> to vector<8x32xf32>
    %306 = arith.subf %298, %305 : vector<8x32xf32>
    %307 = arith.mulf %306, %306 : vector<8x32xf32>
    %cst_135 = arith.constant dense<0.000000e+00> : vector<8xf32>
    %308 = vector.multi_reduction <add>, %307, %cst_135 [1] : vector<8x32xf32> to vector<8xf32>
    %309 = vector.shape_cast %308 : vector<8xf32> to vector<8x1xf32>
    %cst_136 = arith.constant 3.200000e+01 : f32
    %310 = vector.broadcast %cst_136 : f32 to vector<8x1xf32>
    %311 = arith.divf %309, %310 : vector<8x1xf32>
    %312 = vector.broadcast %304 : vector<8x1xf32> to vector<8x32xf32>
    %313 = arith.subf %298, %312 : vector<8x32xf32>
    %cst_137 = arith.constant 9.99999996E-13 : f32
    %314 = vector.broadcast %cst_137 : f32 to vector<8x1xf32>
    %315 = arith.addf %311, %314 : vector<8x1xf32>
    %316 = math.rsqrt %315 : vector<8x1xf32>
    %317 = vector.broadcast %316 : vector<8x1xf32> to vector<8x32xf32>
    %318 = arith.mulf %313, %317 : vector<8x32xf32>
    %319 = vector.broadcast %299 : vector<1x32xf32> to vector<8x32xf32>
    %320 = arith.mulf %318, %319 : vector<8x32xf32>
    %321 = vector.broadcast %300 : vector<1x32xf32> to vector<8x32xf32>
    %322 = arith.addf %320, %321 : vector<8x32xf32>
    %c1_138 = arith.constant 1 : index
    %c0_139 = arith.constant 0 : index
    %c0_140 = arith.constant 0 : index
    %323 = vector.load %arg4[%c1_138, %c0_139, %c0_140] : memref<2x160x96xf32, #tpu.memory_space<vmem>>, vector<1x32x96xf32>
    %324 = vector.shape_cast %323 : vector<1x32x96xf32> to vector<32x96xf32>
    %cst_141 = arith.constant dense<0.000000e+00> : vector<8x96xf32>
    %325 = tpu.matmul %322, %324, %cst_141 {dimension_numbers = #tpu.dot_dimension_numbers<[1], [0], [0], [1], [0, 0, 1, 1], [], []>} : vector<8x32xf32>, vector<32x96xf32>, vector<8x96xf32> -> vector<8x96xf32>
    %c8 = arith.constant 8 : index
    %c0_142 = arith.constant 0 : index
    %326 = vector.load %arg5[%c8, %c0_142] : memref<56x128xf32, #tpu.memory_space<vmem>>, vector<1x96xf32>
    %327 = vector.broadcast %326 : vector<1x96xf32> to vector<8x96xf32>
    %328 = arith.addf %325, %327 : vector<8x96xf32>
    %329 = vector.extract_strided_slice %328 {offsets = [0, 0], sizes = [8, 16], strides = [1, 1]} : vector<8x96xf32> to vector<8x16xf32>
    %330 = vector.extract_strided_slice %328 {offsets = [0, 32], sizes = [8, 16], strides = [1, 1]} : vector<8x96xf32> to vector<8x16xf32>
    %331 = vector.extract_strided_slice %328 {offsets = [0, 64], sizes = [8, 16], strides = [1, 1]} : vector<8x96xf32> to vector<8x16xf32>
    %cst_143 = arith.constant dense<0.000000e+00> : vector<8x8xf32>
    %332 = tpu.matmul %329, %330, %cst_143 {dimension_numbers = #tpu.dot_dimension_numbers<[1], [1], [0], [0], [0, 0, 1, 0], [], []>} : vector<8x16xf32>, vector<8x16xf32>, vector<8x8xf32> -> vector<8x8xf32>
    %333 = vector.broadcast %170 : vector<1x8xf32> to vector<8x8xf32>
    %334 = arith.addf %332, %333 : vector<8x8xf32>
    %cst_144 = arith.constant dense<0xFF800000> : vector<8xf32>
    %335 = vector.multi_reduction <maximumf>, %334, %cst_144 [1] : vector<8x8xf32> to vector<8xf32>
    %336 = vector.shape_cast %335 : vector<8xf32> to vector<8x1xf32>
    %337 = vector.broadcast %336 : vector<8x1xf32> to vector<8x8xf32>
    %338 = arith.subf %334, %337 : vector<8x8xf32>
    %339 = math.exp %338 : vector<8x8xf32>
    %cst_145 = arith.constant dense<0.000000e+00> : vector<8xf32>
    %340 = vector.multi_reduction <add>, %339, %cst_145 [1] : vector<8x8xf32> to vector<8xf32>
    %341 = vector.shape_cast %340 : vector<8xf32> to vector<8x1xf32>
    %342 = tpu.reciprocal %341 {approx = true} : vector<8x1xf32> -> vector<8x1xf32>
    %343 = vector.broadcast %342 : vector<8x1xf32> to vector<8x8xf32>
    %344 = arith.mulf %339, %343 : vector<8x8xf32>
    %cst_146 = arith.constant dense<0.000000e+00> : vector<8x16xf32>
    %345 = tpu.matmul %344, %331, %cst_146 {dimension_numbers = #tpu.dot_dimension_numbers<[1], [0], [0], [1], [0, 0, 1, 1], [], []>} : vector<8x8xf32>, vector<8x16xf32>, vector<8x16xf32> -> vector<8x16xf32>
    %c1_147 = arith.constant 1 : index
    %c32_148 = arith.constant 32 : index
    %c0_149 = arith.constant 0 : index
    %346 = vector.load %arg4[%c1_147, %c32_148, %c0_149] : memref<2x160x96xf32, #tpu.memory_space<vmem>>, vector<1x16x32xf32>
    %347 = vector.shape_cast %346 : vector<1x16x32xf32> to vector<16x32xf32>
    %cst_150 = arith.constant dense<0.000000e+00> : vector<8x32xf32>
    %348 = tpu.matmul %345, %347, %cst_150 {dimension_numbers = #tpu.dot_dimension_numbers<[1], [0], [0], [1], [0, 0, 1, 1], [], []>} : vector<8x16xf32>, vector<16x32xf32>, vector<8x32xf32> -> vector<8x32xf32>
    %349 = vector.extract_strided_slice %328 {offsets = [0, 16], sizes = [8, 16], strides = [1, 1]} : vector<8x96xf32> to vector<8x16xf32>
    %350 = vector.extract_strided_slice %328 {offsets = [0, 48], sizes = [8, 16], strides = [1, 1]} : vector<8x96xf32> to vector<8x16xf32>
    %351 = vector.extract_strided_slice %328 {offsets = [0, 80], sizes = [8, 16], strides = [1, 1]} : vector<8x96xf32> to vector<8x16xf32>
    %cst_151 = arith.constant dense<0.000000e+00> : vector<8x8xf32>
    %352 = tpu.matmul %349, %350, %cst_151 {dimension_numbers = #tpu.dot_dimension_numbers<[1], [1], [0], [0], [0, 0, 1, 0], [], []>} : vector<8x16xf32>, vector<8x16xf32>, vector<8x8xf32> -> vector<8x8xf32>
    %353 = vector.broadcast %170 : vector<1x8xf32> to vector<8x8xf32>
    %354 = arith.addf %352, %353 : vector<8x8xf32>
    %cst_152 = arith.constant dense<0xFF800000> : vector<8xf32>
    %355 = vector.multi_reduction <maximumf>, %354, %cst_152 [1] : vector<8x8xf32> to vector<8xf32>
    %356 = vector.shape_cast %355 : vector<8xf32> to vector<8x1xf32>
    %357 = vector.broadcast %356 : vector<8x1xf32> to vector<8x8xf32>
    %358 = arith.subf %354, %357 : vector<8x8xf32>
    %359 = math.exp %358 : vector<8x8xf32>
    %cst_153 = arith.constant dense<0.000000e+00> : vector<8xf32>
    %360 = vector.multi_reduction <add>, %359, %cst_153 [1] : vector<8x8xf32> to vector<8xf32>
    %361 = vector.shape_cast %360 : vector<8xf32> to vector<8x1xf32>
    %362 = tpu.reciprocal %361 {approx = true} : vector<8x1xf32> -> vector<8x1xf32>
    %363 = vector.broadcast %362 : vector<8x1xf32> to vector<8x8xf32>
    %364 = arith.mulf %359, %363 : vector<8x8xf32>
    %cst_154 = arith.constant dense<0.000000e+00> : vector<8x16xf32>
    %365 = tpu.matmul %364, %351, %cst_154 {dimension_numbers = #tpu.dot_dimension_numbers<[1], [0], [0], [1], [0, 0, 1, 1], [], []>} : vector<8x8xf32>, vector<8x16xf32>, vector<8x16xf32> -> vector<8x16xf32>
    %c1_155 = arith.constant 1 : index
    %c48_156 = arith.constant 48 : index
    %c0_157 = arith.constant 0 : index
    %366 = vector.load %arg4[%c1_155, %c48_156, %c0_157] : memref<2x160x96xf32, #tpu.memory_space<vmem>>, vector<1x16x32xf32>
    %367 = vector.shape_cast %366 : vector<1x16x32xf32> to vector<16x32xf32>
    %cst_158 = arith.constant dense<0.000000e+00> : vector<8x32xf32>
    %368 = tpu.matmul %365, %367, %cst_158 {dimension_numbers = #tpu.dot_dimension_numbers<[1], [0], [0], [1], [0, 0, 1, 1], [], []>} : vector<8x16xf32>, vector<16x32xf32>, vector<8x32xf32> -> vector<8x32xf32>
    %369 = arith.addf %348, %368 : vector<8x32xf32>
    %c9 = arith.constant 9 : index
    %c0_159 = arith.constant 0 : index
    %370 = vector.load %arg5[%c9, %c0_159] : memref<56x128xf32, #tpu.memory_space<vmem>>, vector<1x32xf32>
    %371 = vector.broadcast %370 : vector<1x32xf32> to vector<8x32xf32>
    %372 = arith.addf %369, %371 : vector<8x32xf32>
    %373 = arith.addf %372, %322 : vector<8x32xf32>
    %c10 = arith.constant 10 : index
    %c0_160 = arith.constant 0 : index
    %374 = vector.load %arg5[%c10, %c0_160] : memref<56x128xf32, #tpu.memory_space<vmem>>, vector<1x32xf32>
    %c11 = arith.constant 11 : index
    %c0_161 = arith.constant 0 : index
    %375 = vector.load %arg5[%c11, %c0_161] : memref<56x128xf32, #tpu.memory_space<vmem>>, vector<1x32xf32>
    %cst_162 = arith.constant dense<0.000000e+00> : vector<8xf32>
    %376 = vector.multi_reduction <add>, %373, %cst_162 [1] : vector<8x32xf32> to vector<8xf32>
    %377 = vector.shape_cast %376 : vector<8xf32> to vector<8x1xf32>
    %cst_163 = arith.constant 3.200000e+01 : f32
    %378 = vector.broadcast %cst_163 : f32 to vector<8x1xf32>
    %379 = arith.divf %377, %378 : vector<8x1xf32>
    %380 = vector.broadcast %379 : vector<8x1xf32> to vector<8x32xf32>
    %381 = arith.subf %373, %380 : vector<8x32xf32>
    %382 = arith.mulf %381, %381 : vector<8x32xf32>
    %cst_164 = arith.constant dense<0.000000e+00> : vector<8xf32>
    %383 = vector.multi_reduction <add>, %382, %cst_164 [1] : vector<8x32xf32> to vector<8xf32>
    %384 = vector.shape_cast %383 : vector<8xf32> to vector<8x1xf32>
    %cst_165 = arith.constant 3.200000e+01 : f32
    %385 = vector.broadcast %cst_165 : f32 to vector<8x1xf32>
    %386 = arith.divf %384, %385 : vector<8x1xf32>
    %387 = vector.broadcast %379 : vector<8x1xf32> to vector<8x32xf32>
    %388 = arith.subf %373, %387 : vector<8x32xf32>
    %cst_166 = arith.constant 9.99999996E-13 : f32
    %389 = vector.broadcast %cst_166 : f32 to vector<8x1xf32>
    %390 = arith.addf %386, %389 : vector<8x1xf32>
    %391 = math.rsqrt %390 : vector<8x1xf32>
    %392 = vector.broadcast %391 : vector<8x1xf32> to vector<8x32xf32>
    %393 = arith.mulf %388, %392 : vector<8x32xf32>
    %394 = vector.broadcast %374 : vector<1x32xf32> to vector<8x32xf32>
    %395 = arith.mulf %393, %394 : vector<8x32xf32>
    %396 = vector.broadcast %375 : vector<1x32xf32> to vector<8x32xf32>
    %397 = arith.addf %395, %396 : vector<8x32xf32>
    %c1_167 = arith.constant 1 : index
    %c64_168 = arith.constant 64 : index
    %c0_169 = arith.constant 0 : index
    %398 = vector.load %arg4[%c1_167, %c64_168, %c0_169] : memref<2x160x96xf32, #tpu.memory_space<vmem>>, vector<1x32x64xf32>
    %399 = vector.shape_cast %398 : vector<1x32x64xf32> to vector<32x64xf32>
    %c1_170 = arith.constant 1 : index
    %c96_171 = arith.constant 96 : index
    %c0_172 = arith.constant 0 : index
    %400 = vector.load %arg4[%c1_170, %c96_171, %c0_172] : memref<2x160x96xf32, #tpu.memory_space<vmem>>, vector<1x64x32xf32>
    %401 = vector.shape_cast %400 : vector<1x64x32xf32> to vector<64x32xf32>
    %cst_173 = arith.constant dense<0.000000e+00> : vector<8x64xf32>
    %402 = tpu.matmul %397, %399, %cst_173 {dimension_numbers = #tpu.dot_dimension_numbers<[1], [0], [0], [1], [0, 0, 1, 1], [], []>} : vector<8x32xf32>, vector<32x64xf32>, vector<8x64xf32> -> vector<8x64xf32>
    %c12 = arith.constant 12 : index
    %c0_174 = arith.constant 0 : index
    %403 = vector.load %arg5[%c12, %c0_174] : memref<56x128xf32, #tpu.memory_space<vmem>>, vector<1x64xf32>
    %404 = vector.broadcast %403 : vector<1x64xf32> to vector<8x64xf32>
    %405 = arith.addf %402, %404 : vector<8x64xf32>
    %cst_175 = arith.constant 5.000000e-01 : f32
    %406 = vector.broadcast %cst_175 : f32 to vector<8x64xf32>
    %407 = arith.mulf %406, %405 : vector<8x64xf32>
    %cst_176 = arith.constant 0.707106769 : f32
    %408 = vector.broadcast %cst_176 : f32 to vector<8x64xf32>
    %409 = arith.mulf %405, %408 : vector<8x64xf32>
    %cst_177 = arith.constant 0.000000e+00 : f32
    %410 = vector.broadcast %cst_177 : f32 to vector<8x64xf32>
    %411 = arith.cmpf olt, %409, %410 : vector<8x64xf32>
    %cst_178 = arith.constant -1.000000e+00 : f32
    %cst_179 = arith.constant 1.000000e+00 : f32
    %412 = vector.broadcast %cst_178 : f32 to vector<8x64xf32>
    %413 = vector.broadcast %cst_179 : f32 to vector<8x64xf32>
    %414 = arith.select %411, %412, %413 : vector<8x64xi1>, vector<8x64xf32>
    %415 = math.absf %409 : vector<8x64xf32>
    %cst_180 = arith.constant 0.327591091 : f32
    %416 = vector.broadcast %cst_180 : f32 to vector<8x64xf32>
    %417 = arith.mulf %416, %415 : vector<8x64xf32>
    %cst_181 = arith.constant 1.000000e+00 : f32
    %418 = vector.broadcast %cst_181 : f32 to vector<8x64xf32>
    %419 = arith.addf %418, %417 : vector<8x64xf32>
    %420 = tpu.reciprocal %419 {approx = true} : vector<8x64xf32> -> vector<8x64xf32>
    %cst_182 = arith.constant 1.06140542 : f32
    %421 = vector.broadcast %cst_182 : f32 to vector<8x64xf32>
    %422 = arith.mulf %420, %421 : vector<8x64xf32>
    %cst_183 = arith.constant -1.45315206 : f32
    %423 = vector.broadcast %cst_183 : f32 to vector<8x64xf32>
    %424 = arith.addf %423, %422 : vector<8x64xf32>
    %425 = arith.mulf %420, %424 : vector<8x64xf32>
    %cst_184 = arith.constant 1.42141378 : f32
    %426 = vector.broadcast %cst_184 : f32 to vector<8x64xf32>
    %427 = arith.addf %426, %425 : vector<8x64xf32>
    %428 = arith.mulf %420, %427 : vector<8x64xf32>
    %cst_185 = arith.constant -0.284496725 : f32
    %429 = vector.broadcast %cst_185 : f32 to vector<8x64xf32>
    %430 = arith.addf %429, %428 : vector<8x64xf32>
    %431 = arith.mulf %420, %430 : vector<8x64xf32>
    %cst_186 = arith.constant 0.254829586 : f32
    %432 = vector.broadcast %cst_186 : f32 to vector<8x64xf32>
    %433 = arith.addf %432, %431 : vector<8x64xf32>
    %434 = arith.mulf %420, %433 : vector<8x64xf32>
    %cst_187 = arith.constant 0.000000e+00 : f32
    %435 = vector.broadcast %cst_187 : f32 to vector<8x64xf32>
    %436 = arith.subf %435, %415 : vector<8x64xf32>
    %437 = arith.mulf %436, %415 : vector<8x64xf32>
    %438 = math.exp %437 : vector<8x64xf32>
    %439 = arith.mulf %434, %438 : vector<8x64xf32>
    %cst_188 = arith.constant 1.000000e+00 : f32
    %440 = vector.broadcast %cst_188 : f32 to vector<8x64xf32>
    %441 = arith.subf %440, %439 : vector<8x64xf32>
    %442 = arith.mulf %414, %441 : vector<8x64xf32>
    %cst_189 = arith.constant 1.000000e+00 : f32
    %443 = vector.broadcast %cst_189 : f32 to vector<8x64xf32>
    %444 = arith.addf %443, %442 : vector<8x64xf32>
    %445 = arith.mulf %407, %444 : vector<8x64xf32>
    %cst_190 = arith.constant dense<0.000000e+00> : vector<8x32xf32>
    %446 = tpu.matmul %445, %401, %cst_190 {dimension_numbers = #tpu.dot_dimension_numbers<[1], [0], [0], [1], [0, 0, 1, 1], [], []>} : vector<8x64xf32>, vector<64x32xf32>, vector<8x32xf32> -> vector<8x32xf32>
    %c13 = arith.constant 13 : index
    %c0_191 = arith.constant 0 : index
    %447 = vector.load %arg5[%c13, %c0_191] : memref<56x128xf32, #tpu.memory_space<vmem>>, vector<1x32xf32>
    %448 = vector.broadcast %447 : vector<1x32xf32> to vector<8x32xf32>
    %449 = arith.addf %446, %448 : vector<8x32xf32>
    %450 = arith.addf %449, %397 : vector<8x32xf32>
    %c14 = arith.constant 14 : index
    %c0_192 = arith.constant 0 : index
    %451 = vector.load %arg5[%c14, %c0_192] : memref<56x128xf32, #tpu.memory_space<vmem>>, vector<1x32xf32>
    %c15 = arith.constant 15 : index
    %c0_193 = arith.constant 0 : index
    %452 = vector.load %arg5[%c15, %c0_193] : memref<56x128xf32, #tpu.memory_space<vmem>>, vector<1x32xf32>
    %cst_194 = arith.constant dense<0.000000e+00> : vector<8xf32>
    %453 = vector.multi_reduction <add>, %450, %cst_194 [1] : vector<8x32xf32> to vector<8xf32>
    %454 = vector.shape_cast %453 : vector<8xf32> to vector<8x1xf32>
    %cst_195 = arith.constant 3.200000e+01 : f32
    %455 = vector.broadcast %cst_195 : f32 to vector<8x1xf32>
    %456 = arith.divf %454, %455 : vector<8x1xf32>
    %457 = vector.broadcast %456 : vector<8x1xf32> to vector<8x32xf32>
    %458 = arith.subf %450, %457 : vector<8x32xf32>
    %459 = arith.mulf %458, %458 : vector<8x32xf32>
    %cst_196 = arith.constant dense<0.000000e+00> : vector<8xf32>
    %460 = vector.multi_reduction <add>, %459, %cst_196 [1] : vector<8x32xf32> to vector<8xf32>
    %461 = vector.shape_cast %460 : vector<8xf32> to vector<8x1xf32>
    %cst_197 = arith.constant 3.200000e+01 : f32
    %462 = vector.broadcast %cst_197 : f32 to vector<8x1xf32>
    %463 = arith.divf %461, %462 : vector<8x1xf32>
    %464 = vector.broadcast %456 : vector<8x1xf32> to vector<8x32xf32>
    %465 = arith.subf %450, %464 : vector<8x32xf32>
    %cst_198 = arith.constant 9.99999996E-13 : f32
    %466 = vector.broadcast %cst_198 : f32 to vector<8x1xf32>
    %467 = arith.addf %463, %466 : vector<8x1xf32>
    %468 = math.rsqrt %467 : vector<8x1xf32>
    %469 = vector.broadcast %468 : vector<8x1xf32> to vector<8x32xf32>
    %470 = arith.mulf %465, %469 : vector<8x32xf32>
    %471 = vector.broadcast %451 : vector<1x32xf32> to vector<8x32xf32>
    %472 = arith.mulf %470, %471 : vector<8x32xf32>
    %473 = vector.broadcast %452 : vector<1x32xf32> to vector<8x32xf32>
    %474 = arith.addf %472, %473 : vector<8x32xf32>
    %cst_199 = arith.constant dense<0xFF800000> : vector<32xf32>
    %475 = vector.multi_reduction <maximumf>, %474, %cst_199 [0] : vector<8x32xf32> to vector<32xf32>
    %476 = vector.shape_cast %475 : vector<32xf32> to vector<1x32xf32>
    %c24 = arith.constant 24 : index
    %c0_200 = arith.constant 0 : index
    %477 = vector.load %arg5[%c24, %c0_200] : memref<56x128xf32, #tpu.memory_space<vmem>>, vector<32x128xf32>
    %cst_201 = arith.constant dense<0.000000e+00> : vector<1x128xf32>
    %478 = tpu.matmul %476, %477, %cst_201 {dimension_numbers = #tpu.dot_dimension_numbers<[1], [0], [0], [1], [0, 0, 1, 1], [], []>} : vector<1x32xf32>, vector<32x128xf32>, vector<1x128xf32> -> vector<1x128xf32>
    %c18 = arith.constant 18 : index
    %c0_202 = arith.constant 0 : index
    %479 = vector.load %arg5[%c18, %c0_202] : memref<56x128xf32, #tpu.memory_space<vmem>>, vector<1x128xf32>
    %480 = arith.addf %478, %479 : vector<1x128xf32>
    %481 = vector.shape_cast %480 : vector<1x128xf32> to vector<1x1x128xf32>
    %482 = vector.broadcast %481 : vector<1x1x128xf32> to vector<1x8x128xf32>
    %c0_203 = arith.constant 0 : index
    %c0_204 = arith.constant 0 : index
    %c0_205 = arith.constant 0 : index
    %483 = vector.load %arg6[%c0_203, %c0_204, %c0_205] : memref<1x8x128xf32, #tpu.memory_space<vmem>>, vector<1x8x128xf32>
    tpu.vector_store %arg6[%c0_203, %c0_204, %c0_205], %482 {strides = array<i32>} : memref<1x8x128xf32, #tpu.memory_space<vmem>>, vector<1x8x128xf32>,
    return
  }
  func.func @transform_0(%arg0: i32, %arg1: memref<2x8xi32, #tpu.memory_space<smem>>, %arg2: memref<2x8xi32, #tpu.memory_space<smem>>) -> (i32, i32) {
    %c0_i32 = arith.constant 0 : i32
    %c0_i32_0 = arith.constant 0 : i32
    %c0_i32_1 = arith.constant 0 : i32
    return %c0_i32, %c0_i32_0 : i32, i32
  }
  func.func @transform_1(%arg0: i32, %arg1: memref<2x8xi32, #tpu.memory_space<smem>>, %arg2: memref<2x8xi32, #tpu.memory_space<smem>>) -> (i32, i32, i32) {
    %c0_i32 = arith.constant 0 : i32
    %c0_i32_0 = arith.constant 0 : i32
    %c0_i32_1 = arith.constant 0 : i32
    %c0_i32_2 = arith.constant 0 : i32
    return %c0_i32, %c0_i32_0, %c0_i32_1 : i32, i32, i32
  }
  func.func @transform_2(%arg0: i32, %arg1: memref<2x8xi32, #tpu.memory_space<smem>>, %arg2: memref<2x8xi32, #tpu.memory_space<smem>>) -> (i32, i32) {
    %c0_i32 = arith.constant 0 : i32
    %c0_i32_0 = arith.constant 0 : i32
    %c0_i32_1 = arith.constant 0 : i32
    return %c0_i32, %c0_i32_0 : i32, i32
  }
  func.func @transform_3(%arg0: i32, %arg1: memref<2x8xi32, #tpu.memory_space<smem>>, %arg2: memref<2x8xi32, #tpu.memory_space<smem>>) -> (i32, i32, i32) {
    %c0_i32 = arith.constant 0 : i32
    %c0_i32_0 = arith.constant 0 : i32
    %c0_i32_1 = arith.constant 0 : i32
    return %arg0, %c0_i32, %c0_i32_0 : i32, i32, i32
  }
}

</mosaic_0001>

<bundles_post_ra>
// kernel: emotion_model_forward.1
= control target key start
LH: loop header
LB: loop body
LE: loop exit
PB: predicated region body
PF: predicated region fallthrough
CT: control target
= control target key end

     0   :  { %s3013_s0 = inlined_call_operand.vmem [shape: s32[2,8], index: 0, kind: input, shape index: {}]   ;;  %s3014_s2 = inlined_call_operand.vmem [shape: f32[116,32], index: 2, kind: input, shape index: {}]   ;;  %s3015_s3 = inlined_call_operand.hbm [shape: f32[2,160,96], index: 3, kind: input, shape index: {}]   ;;  %s3016_s4 = inlined_call_operand.vmem [shape: f32[56,128], index: 4, kind: input, shape index: {}]   ;;  %s3017_s5 = inlined_call_operand.vmem [shape: f32[2,8,128], index: 5, kind: output, shape index: {}]   ;;  %s3018_s1 = inlined_call_operand.vmem [shape: s32[2,8], index: 1, kind: input, shape index: {}]  }
   0x1   :  { %s10_s20 = sshll.u32 %s3013_s0, 4  ;;  %s14_s23 = sshll.u32 %s3018_s1, 4  ;;  %s11_s20 = int_to_ptr.vmem [resolvable:$true] %s10_s20  ;;  %s15_s23 = int_to_ptr.vmem [resolvable:$true] %s14_s23 }
   0x2   :  { %s2523_s24 = scalar_lea.vmem %s11_s20, 32  ;;  %p2528_p1 = scmp.lt.s32.totalorder %s11_s20, %s11_s20 }
   0x3   :  { %p2524_p0 = scmp.ne.s32.totalorder %s11_s20, %s2523_s24  ;;  %p2529_p2 = scmp.lt.s32.totalorder %s2523_s24, %s2523_s24 }
   0x5   :  { %p2530_p3 = por %p2529_p2, %p2528_p1 }
   0x7   :  { %p2531_p4 = pnand %p2530_p3, %p2524_p0 }
   0x9   :  { %2534 = shalt.err (!%p2531_p4)  }
   0xa   :  { %s2589_s25 = smov [#allocation4]   ;;  %s2535_s26 = scalar_lea.vmem %s15_s23, 32 }
   0xb   :  { %13 = dma.vmem_to_smem %s11_s20, 32, %s2589_s25, [#allocation3] }
   0xc   :  { %p2536_p5 = scmp.ne.s32.totalorder %s15_s23, %s2535_s26  ;;  %p2540_p6 = scmp.lt.s32.totalorder %s15_s23, %s15_s23 }
   0xd   :  { %p2541_p7 = scmp.lt.s32.totalorder %s2535_s26, %s2535_s26 }
   0xf   :  { %p2542_p8 = por %p2541_p7, %p2540_p6 }
  0x11   :  { %p2543_p9 = pnand %p2542_p8, %p2536_p5 }
  0x13   :  { %2546 = shalt.err (!%p2543_p9)  }
  0x14   :  { %s2590_s0 = smov [#allocation5]  }
  0x15   :  { %17 = dma.vmem_to_smem %s15_s23, 32, %s2590_s0, [#allocation3] }
  0x16   :  { %2579 = dma.done.wait [#allocation3], 64 }
  0x17   :  { %2580 = vsyncadd [#allocation3], 4294967232 }
  0x18   :  { %19 = sfence }
  0x19   :  { %20 = vsyncpa [#allocation7], 0  ;;  %s2639_s1 = smov 0  }
  0x1a LB: > { %s2645_s27 = sadd.s32 4294967295, %s2587_s1   ;;  %p2110_p10 = scmp.ge.s32.totalorder %s2587_s1, 1  ;;  %s2587_s1 = sphi %s2639_s1, %s26_s1  }
  0x1b   : > { %p120_p11 = scmp.lt.s32.totalorder %s2587_s1, 3  ;;  %s2591_s28 = smov [#allocation6]  }
  0x1c   : > { %s135_s29 = sshll.u32 %s2591_s28, 4  ;;  %p3019_p13 = scmp.eq.s32.totalorder %s2645_s27, 0  ;;  %s136_s29 = int_to_ptr.vmem [resolvable:$true] %s135_s29 }
  0x1d   : > { %p2649_p12 = pnand %p2110_p10, %p120_p11  ;;  %s2547_s9 = scalar_lea.hbm %s3015_s3, 5120 }
  0x1e   : > { %p2548_p2 = scmp.ne.s32.totalorder %s3015_s3, %s2547_s9  ;;  %p2554_p6 = scmp.lt.u32.totalorder %s2547_s9, %s3015_s3 }
  0x1f   : > { %s3021_s30 = scalar_select %p2649_p12, 1, 0 }
  0x20   : > { %p2461_p0 = pneg %p2649_p12 }
  0x22   : > { %p2658_p1 = pnand %p3019_p13, %p2461_p0 }
  0x24   : > { %p2549_p3 = pneg %p2658_p1 }
  0x26   : > { %p2550_p4 = pnand %p2549_p3, %p2548_p2 }
  0x28   : > { %p2551_p5 = pneg %p2550_p4 }
  0x2a   : > { %p2556_p7 = pnand %p2554_p6, %p2551_p5 }
  0x2c   : > { %2559 = shalt.err (!%p2556_p7)
}
  0x2d   : > { %s2560_s14 = scalar_lea.vmem %s136_s29, 5120  ;;  %p2568_p11 = scmp.lt.s32.totalorder %s136_s29, %s136_s29 }
  0x2e   : > { %p2561_p8 = scmp.ne.s32.totalorder %s136_s29, %s2560_s14  ;;  %p2569_p0 = scmp.lt.s32.totalorder %s2560_s14, %s2560_s14 }
  0x30   : > { %p2563_p9 = pnand %p2561_p8, %p2549_p3  ;;  %p2570_p13 = por %p2569_p0, %p2568_p11 }
  0x32   : > { %p2564_p10 = pneg %p2563_p9 }
  0x34   : > { %p2571_p12 = pnand %p2570_p13, %p2564_p10 }
  0x36   : > { %2574 = shalt.err (!%p2571_p12)
}
  0x37   : > { %s2592_s15 = smov 128   ;;  %s2593_s16 = smov 8  }
  0x38   : > { %2464 = dma.hbm_to_vmem [thread:$0]  (!%p2658_p1), %s3015_s3, 5120, %s136_s29, [#allocation7], %s2592_s15, %s2592_s15, %s2593_s16  }
  0x39   : > { %p3023_p2 = scmp.ne.s32.totalorder %s3021_s30, 0 }
  0x3a   : > { %p3024_p4 = scmp.eq.s32.totalorder (!%p3023_p2), %s2645_s27, 0 }
  0x3b   : > { %154 = sbr.rel (%p3023_p2) target bundleno = 5432 (0x1538), region = 32 }
  0x42   : > { %2582 = dma.done.wait (%p3024_p4), [#allocation7], 5120   ;;  %p3025_p3 = pmov %p3024_p4 }
  0x43   : > { %s2685_s19 = sshll.u32 %s2645_s27, 7  ;;  %v180_v0 = vld [vmem:[%s3014_s2 + $0x64] sm:$0x1]  ;;  %v188_v1 = vld [vmem:[%s3014_s2 + $0x65] sm:$0x1]  ;;  %vm182_vm0 = vcmask 253952   ;;  %v261_v55 = vlaneseq }
  0x44   : > { %2584 = vsyncadd (%p3025_p3), [#allocation7], 4294962176  ;;  %s177_s20 = sld [smem:[#allocation4 + %s2685_s19]]  ;;  %s184_s21 = sadd.s32 1, %s2685_s19  ;;  %v195_v3 = vld [vmem:[%s3014_s2 + $0x66] sm:$0x1] }
  0x45   : > { %s185_s22 = sld [smem:[#allocation4 + %s184_s21]]  ;;  %s191_s23 = sadd.s32 2, %s2685_s19  ;;  %v202_v6 = vld [vmem:[%s3014_s2 + $0x67] sm:$0x1]  ;;  %v209_v9 = vld [vmem:[%s3014_s2 + $0x68] sm:$0x1] }
  0x46   : > { %s192_s24 = sld [smem:[#allocation4 + %s191_s23]]  ;;  %s198_s25 = sadd.s32 3, %s2685_s19  ;;  %v216_v12 = vld [vmem:[%s3014_s2 + $0x69] sm:$0x1]  ;;  %v223_v18 = vld [vmem:[%s3014_s2 + $0x6a] sm:$0x1] }
  0x47   : > { %s199_s26 = sld [smem:[#allocation4 + %s198_s25]]  ;;  %s205_s0 = sadd.s32 4, %s2685_s19  ;;  %v230_v20 = vld [vmem:[%s3014_s2 + $0x6b] sm:$0x1]  ;;  %vm236_vm1 = vcmask 261120   ;;  %v328_v32 = vld [vmem:[#allocation6 + $0x8] sm:$0xff] }
  0x48   : > { %s2700_s28 = sld [smem:[#allocation4 + %s205_s0]]  ;;  %s212_s29 = sadd.s32 5, %s2685_s19  ;;  %v327_v31 = vld [vmem:[#allocation6] sm:$0xff]  ;;  %v329_v33 = vld [vmem:[#allocation6 + $0x10] sm:$0xff]  ;;  %v2594_v34 = vmov 0.0|0.0   ;;  %v330_v36 = vld [vmem:[#allocation6 + $0x18] sm:$0xff] }
  0x49   : > { %s2705_s30 = sld [smem:[#allocation4 + %s212_s29]]  ;;  %s219_s6 = sadd.s32 6, %s2685_s19  ;;  %2391 = vmatprep.subr.bf16.mxu0 %v2594_v34  ;;  %v2392_v35 = vpack.c.bf16 %v328_v32, %v327_v31  ;;  %vm2595_vm2 = vmmov 0   ;;  %v2596_v37 = vmov 0.0   ;;  %v2395_v38 = vpack.c.bf16 %v330_v36, %v329_v33  ;;  %v2116_v43 = vld [vmem:[%s3016_s4 + $0x10] ss:$0 sm:$0xff] }
  0x4a   : > { %s178_s9 = scalar_lea.vmem %s3014_s2, %s177_s20  ;;  %2238 = vmatprep.mubr.msk.f32.mxu0 %vm2595_vm2, %v2596_v37  ;;  %2241 = vmatprep.subr.mxu1 %v2596_v37  ;;  %v2117_v45 = vld [vmem:[%s3016_s4 + $0x11] ss:$0 sm:$0xff]  ;;  %v2118_v48 = vld [vmem:[%s3016_s4] ss:$0 sm:$0xff]  ;;  %vm412_vm3 = vcmask 130048   ;;  %s263_s12 = sld [smem:[#allocation5 + %s2685_s19]] }
  0x4b   : > { %v179_v2 = vld [vmem:[%s178_s9] sm:$0x1]  ;;  %s186_s16 = scalar_lea.vmem %s3014_s2, %s185_s22  ;;  %s220_s9 = sld [smem:[#allocation4 + %s219_s6]]  ;;  %2243 = vmatprep.mubr.msk.f32.mxu1 %vm2595_vm2, %v2596_v37  ;;  %2393 = vmatpush3.bf16.msra.mxu0 %v2392_v35  ;;  %v262_v56 = vand.u32 127, %v261_v55  ;;  %vm487_vm12 = vcmask 64512   ;;  %vm1043_vm14 = vcmask 523264  }
  0x4c   : > { %v181_v4 = vadd.f32 %v180_v0, %v179_v2  ;;  %v187_v5 = vld [vmem:[%s186_s16] sm:$0x1]  ;;  %s193_s8 = scalar_lea.vmem %s3014_s2, %s192_s24  ;;  %s226_s16 = sadd.s32 7, %s2685_s19  ;;  %2394 = vmatprep.subr.bf16.mxu0 %v2594_v34 }
  0x4d   : > { %v189_v7 = vadd.f32 %v188_v1, %v187_v5  ;;  %v194_v8 = vld [vmem:[%s193_s8] sm:$0x1]  ;;  %s200_s13 = scalar_lea.vmem %s3014_s2, %s199_s26  ;;  %s227_s8 = sld [smem:[#allocation4 + %s226_s16]]  ;;  %vm267_vm4 = vcmp.eq.s32.totalorder %v262_v56, 0  ;;  %vm275_vm5 = vcmp.eq.s32.totalorder %v262_v56, 1  ;;  %vm283_vm6 = vcmp.eq.s32.totalorder %v262_v56, 2 }
  0x4e   : > { %183 = vst.msk [vmem:[#allocation2] sm:$0x1] %vm182_vm0, %v181_v4  ;;  %v196_v10 = vadd.f32 %v195_v3, %v194_v8  ;;  %v201_v11 = vld [vmem:[%s200_s13] sm:$0x1]  ;;  %s207_s18 = scalar_lea.vmem %s3014_s2, %s2700_s28  ;;  %s2598_s28 = smov 96   ;;  %vm291_vm7 = vcmp.eq.s32.totalorder %v262_v56, 3 }
  0x4f   : > { %190 = vst.msk [vmem:[#allocation2 + $0x1] sm:$0x1] %vm182_vm0, %v189_v7  ;;  %v203_v13 = vadd.f32 %v202_v6, %v201_v11  ;;  %v208_v14 = vld [vmem:[%s207_s18] sm:$0x1]  ;;  %s214_s11 = scalar_lea.vmem %s3014_s2, %s2705_s30  ;;  %2396 = vmatpush3.bf16.msra.mxu0 %v2395_v38  ;;  %s2599_s22 = smov 80   ;;  %vm299_vm8 = vcmp.eq.s32.totalorder %v262_v56, 4 }
  0x50   : > { %197 = vst.msk [vmem:[#allocation2 + $0x2] sm:$0x1] %vm182_vm0, %v196_v10  ;;  %v210_v15 = vadd.f32 %v209_v9, %v208_v14  ;;  %v215_v16 = vld [vmem:[%s214_s11] sm:$0x1]  ;;  %2251 = vmatprep.subr.mxu0 %v2596_v37  ;;  %s2597_s11 = smov 112   ;;  %s271_s13 = sld [smem:[#allocation5 + %s184_s21]] }
  0x51   : > { %204 = vst.msk [vmem:[#allocation2 + $0x3] sm:$0x1] %vm182_vm0, %v203_v13  ;;  %v217_v17 = vadd.f32 %v216_v12, %v215_v16  ;;  %s221_s14 = scalar_lea.vmem %s3014_s2, %s220_s9  ;;  %s264_s30 = ssub.s32 1, %s263_s12  ;;  %vm307_vm9 = vcmp.eq.s32.totalorder %v262_v56, 5  ;;  %vm315_vm10 = vcmp.eq.s32.totalorder %v262_v56, 6  ;;  %vm323_vm11 = vcmp.eq.s32.totalorder %v262_v56, 7 }
  0x52   : > { %211 = vst.msk [vmem:[#allocation2 + $0x4] sm:$0x1] %vm182_vm0, %v210_v15  ;;  %v222_v19 = vld [vmem:[%s221_s14] sm:$0x1]  ;;  %s279_s14 = sld [smem:[#allocation5 + %s191_s23]]  ;;  %s265_s17 = scvt.s32.f32 %s264_s30 }
  0x53   : > { %218 = vst.msk [vmem:[#allocation2 + $0x5] sm:$0x1] %vm182_vm0, %v217_v17  ;;  %v224_v21 = vadd.f32 %v223_v18, %v222_v19  ;;  %s228_s18 = scalar_lea.vmem %s3014_s2, %s227_s8  ;;  %s287_s24 = sld [smem:[#allocation5 + %s198_s25]] }
  0x54   : > { %v229_v22 = vld [vmem:[%s228_s18] sm:$0x1]  ;;  %s295_s20 = sld [smem:[#allocation5 + %s205_s0]]  ;;  %s266_s7 = smul.f32 -1e+09, %s265_s17 }
  0x55   : > { %225 = vst.msk [vmem:[#allocation2 + $0x6] sm:$0x1] %vm182_vm0, %v224_v21  ;;  %v231_v23 = vadd.f32 %v230_v20, %v229_v22  ;;  %s303_s21 = sld [smem:[#allocation5 + %s212_s29]]  ;;  %p172_p12 = scmp.lt.s32.totalorder %s2645_s27, 1 }
  0x56   : > { %s272_s15 = ssub.s32 1, %s271_s13  ;;  %v268_v57 = vstv %s266_s7  ;;  %s311_s13 = sld [smem:[#allocation5 + %s219_s6]] }
  0x57   : > { %232 = vst.msk [vmem:[#allocation2 + $0x7] sm:$0x1] %vm182_vm0, %v231_v23  ;;  %s273_s18 = scvt.s32.f32 %s272_s15  ;;  %v269_v59 = vsel %vm267_vm4, %v268_v57, 0.0  ;;  %s319_s15 = sld [smem:[#allocation5 + %s226_s16]] }
  0x58   : > { %s280_s9 = ssub.s32 1, %s279_s14  ;;  %s2600_s7 = smov 48  }
  0x59   : > { %s274_s8 = smul.f32 -1e+09, %s273_s18  ;;  %s281_s26 = scvt.s32.f32 %s280_s9 }
  0x5a   : > { %s288_s10 = ssub.s32 1, %s287_s24  ;;  %s296_s12 = ssub.s32 1, %s295_s20 }
  0x5b   : > { %v276_v58 = vstv %s274_s8  ;;  %s282_s23 = smul.f32 -1e+09, %s281_s26  ;;  %s289_s25 = scvt.s32.f32 %s288_s10 }
  0x5c   : > { %v277_v60 = vsel %vm275_vm5, %v276_v58, 0.0  ;;  %s297_s14 = scvt.s32.f32 %s296_s12  ;;  %s304_s30 = ssub.s32 1, %s303_s21 }
  0x5d   : > { %v284_v61 = vstv %s282_s23  ;;  %s290_s0 = smul.f32 -1e+09, %s289_s25  ;;  %v278_v62 = vadd.f32 %v277_v60, %v269_v59  ;;  %s305_s24 = scvt.s32.f32 %s304_s30  ;;  %v2128_v59 = vld [vmem:[%s3016_s4 + $0x1] ss:$0 sm:$0xff] }
  0x5e   : > { %v233_v24 = vld [vmem:[#allocation2] sm:$0xff]  ;;  %v285_v63 = vsel %vm283_vm6, %v284_v61, 0.0  ;;  %s298_s29 = smul.f32 -1e+09, %s297_s14  ;;  %s312_s17 = ssub.s32 1, %s311_s13 }
  0x5f   : > { %v237_v25 = vsel %vm236_vm1, %v233_v24, 0.0  ;;  %v292_v0 = vstv %s290_s0  ;;  %v286_v1 = vadd.f32 %v285_v63, %v278_v62  ;;  %s306_s6 = smul.f32 -1e+09, %s305_s24  ;;  %s313_s18 = scvt.s32.f32 %s312_s17 }
  0x60   : > { %238 = vadd.xlane.f32.xlu0 %v237_v25  ;;  %v293_v2 = vsel %vm291_vm7, %v292_v0, 0.0  ;;  %v300_v3 = vstv %s298_s29  ;;  %s320_s9 = ssub.s32 1, %s319_s15  ;;  %s2601_s8 = smov 64  }
  0x61   : > { %v294_v4 = vadd.f32 %v293_v2, %v286_v1  ;;  %v301_v5 = vsel %vm299_vm8, %v300_v3, 0.0  ;;  %v308_v6 = vstv %s306_s6  ;;  %s314_s19 = smul.f32 -1e+09, %s313_s18  ;;  %s321_s16 = scvt.s32.f32 %s320_s9 }
  0x62   : > { %v309_v8 = vsel %vm307_vm9, %v308_v6, 0.0  ;;  %v922_v6 = vld [vmem:[#allocation6 + $0x40] sm:$0xff]  ;;  %s3027_s27 = smov (!%p172_p12, %s2645_s27), 1 }
  0x63   : > { %v302_v7 = vadd.f32 %v301_v5, %v294_v4  ;;  %v316_v9 = vstv %s314_s19  ;;  %s322_s20 = smul.f32 -1e+09, %s321_s16  ;;  %s2114_s18 = sshll.u32 %s3027_s27, 3 }
  0x64   : > { %v317_v11 = vsel %vm315_vm10, %v316_v9, 0.0  ;;  %v924_v9 = vld [vmem:[#allocation6 + $0x50] sm:$0xff] }
  0x65   : > { %v310_v10 = vadd.f32 %v309_v8, %v302_v7  ;;  %v324_v12 = vstv %s322_s20  ;;  %v923_v7 = vld [vmem:[#allocation6 + $0x48] sm:$0xff] }
  0x66   : > { %v325_v14 = vsel %vm323_vm11, %v324_v12, 0.0  ;;  %v2404_v8 = vpack.c.bf16 %v923_v7, %v922_v6 }
  0x67   : > { %v318_v13 = vadd.f32 %v317_v11, %v310_v10  ;;  %v925_v10 = vld [vmem:[#allocation6 + $0x58] sm:$0xff] }
  0x68   : > { %v2407_v11 = vpack.c.bf16 %v925_v10, %v924_v9 }
  0x69   : > { %v2831_v15 = vadd.f32 %v325_v14, %v318_v13 }
  0xed   : > { %v239_v26 = vpop.xlane.xlu0 %238 }
  0xee   : > { %v241_v27 = vmul.f32 0.03125, %v239_v26 }
  0xf0   : > { %v242_v28 = vsub.f32 %v233_v24, %v241_v27 }
  0xf2   : > { %v243_v29 = vmul.f32 %v242_v28, %v242_v28 }
  0xf4   : > { %v244_v30 = vsel %vm236_vm1, %v243_v29, 0.0 }
  0xf5   : > { %245 = vadd.xlane.f32.xlu0 %v244_v30 }
 0x182   : > { %v246_v39 = vpop.xlane.xlu0 %245 }
 0x183   : > { %v247_v40 = vmul.f32 0.03125, %v246_v39 }
 0x185   : > { %v248_v41 = vadd.f32 1e-12, %v247_v40 }
 0x187   : > { %2489 = vrsqrt.f32 %v248_v41  ;;  %v575_v41 = vld [vmem:[#allocation6 + $0x20] sm:$0xff] }
 0x191   : > { %v2490_v42 = vpop.eup %2489 }
 0x192   : > { %v250_v44 = vmul.f32 %v2490_v42, %v242_v28  ;;  %v576_v42 = vld [vmem:[#allocation6 + $0x28] sm:$0xff] }
 0x194   : > { %v255_v46 = vmul.f32 %v2116_v43, %v250_v44 }
 0x196   : > { %v2787_v47 = vadd.f32 %v2117_v45, %v255_v46  ;;  %v2401_v45 = vpack.c.bf16 %v576_v42, %v575_v41 }
 0x198   : > { %2239 = vmatmul.mubr.msk.f32.vlgmr.msra.gmra.mrb[0].mxu0 %vm236_vm1, %v2787_v47 }
 0x199   : > { %2253 = vmatprep.mubr.msk.f32.mxu0 %vm2595_vm2, %v2596_v37 }
 0x26b   : > { %v405_v49 = vpop.f32.mrb[0].mxu0 }
 0x26c   : > { %v2796_v50 = vadd.f32 %v2118_v48, %v405_v49  ;;  %v2240_v51 = vpop.f32.mrb[1].mxu0  ;;  %v742_v48 = vld [vmem:[#allocation6 + $0x30] sm:$0xff]  ;;  %v743_v49 = vld [vmem:[#allocation6 + $0x38] sm:$0xff] }
 0x26e   : > { %577 = vrot.lane.b32.xlu0 %v2796_v50, %s2597_s11  ;;  %410 = vrot.lane.b32.xlu1 %v2796_v50, %s2598_s28 }
 0x272   : > { %579 = vrot.lane.b32.xlu1 %v2796_v50, %s2599_s22 }
 0x2e0   : > { %v411_v52 = vpop.permute.xlu1 %410  ;;  %v578_v54 = vpop.permute.xlu0 %577 }
 0x2e1   : > { %2242 = vmatpush3.xpose.msk.msra.mxu1 %vm412_vm3, %v411_v52 }
 0x2e2   : > { %2246 = vmatprep.subr.mxu1 %v2596_v37 }
 0x2e4   : > { %2244 = vmatmul.mubr.msk.f32.vlgmr.msra.gmra.mrb[0].mxu1 %vm412_vm3, %v2796_v50  ;;  %v580_v53 = vpop.permute.xlu1 %579 }
 0x2e5   : > { %2252 = vmatpush3.xpose.msk.msra.mxu0 %vm412_vm3, %v580_v53  ;;  %2248 = vmatprep.mubr.msk.f32.mxu1 %vm2595_vm2, %v2596_v37 }
 0x2e6   : > { %2397 = vmatprep.subr.bf16.mxu0 %v2594_v34 }
 0x2e8   : > { %2254 = vmatmul.mubr.msk.f32.vlgmr.msra.gmra.mrb[2].mxu0 %vm412_vm3, %v578_v54 }
 0x2e9   : > { %2265 = vmatprep.mubr.msk.f32.mxu0 %vm2595_vm2, %v2596_v37 }
 0x3b7   : > { %v483_v16 = vpop.f32.mrb[0].mxu1 }
 0x3b8   : > { %v484_v17 = vadd.f32 %v483_v16, %v2831_v15  ;;  %v2245_v18 = vpop.f32.mrb[1].mxu1  ;;  %v2129_v16 = vld [vmem:[%s3016_s4 + $0x2] ss:$0 sm:$0xff] }
 0x3b9   : > { %v2130_v18 = vld [vmem:[%s3016_s4 + $0x3] ss:$0 sm:$0xff] }
 0x3ba   : > { %v488_v19 = vsel %vm487_vm12, %v484_v17, -inf }
 0x3bb   : > { %489 = vmax.xlane.f32.xlu1 %v488_v19  ;;  %v651_v20 = vpop.f32.mrb[2].mxu0 }
 0x3bc   : > { %v652_v21 = vadd.f32 %v651_v20, %v2831_v15  ;;  %v2255_v22 = vpop.f32.mrb[3].mxu0 }
 0x3bd   : > { %v927_v22 = vld [vmem:[#allocation6 + $0x68] sm:$0xff] }
 0x3be   : > { %v655_v23 = vsel %vm487_vm12, %v652_v21, -inf }
 0x3bf   : > { %656 = vmax.xlane.f32.xlu0 %v655_v23 }
 0x3d5   : > { %666 = vrot.lane.b32.xlu0 %v2796_v50, %s2600_s7 }
 0x448   : > { %v490_v24 = vpop.xlane.xlu1 %489 }
 0x449   : > { %v491_v25 = vsub.f32 %v484_v17, %v490_v24  ;;  %v928_v24 = vld [vmem:[#allocation6 + $0x70] sm:$0xff] }
 0x44b   : > { %v492_v26 = vmul.f32 1.442695, %v491_v25  ;;  %v929_v25 = vld [vmem:[#allocation6 + $0x78] sm:$0xff] }
 0x44c   : > { %v657_v27 = vpop.xlane.xlu0 %656 }
 0x44d   : > { %2491 = vpow2.f32 %v492_v26  ;;  %v658_v28 = vsub.f32 %v652_v21, %v657_v27  ;;  %v926_v21 = vld [vmem:[#allocation6 + $0x60] sm:$0xff]  ;;  %v2413_v26 = vpack.c.bf16 %v929_v25, %v928_v24  ;;  %v2135_v24 = vld [vmem:[%s3016_s4 + $0x6] ss:$0 sm:$0xff] }
 0x44e   : > { %v2410_v23 = vpack.c.bf16 %v927_v22, %v926_v21  ;;  %v930_v27 = vld [vmem:[#allocation6 + $0x80] sm:$0xff] }
 0x44f   : > { %v659_v29 = vmul.f32 1.442695, %v658_v28  ;;  %v931_v28 = vld [vmem:[#allocation6 + $0x88] sm:$0xff] }
 0x450   : > { %v667_v43 = vpop.permute.xlu0 %666 }
 0x451   : > { %2493 = vpow2.f32 %v659_v29  ;;  %v2416_v29 = vpack.c.bf16 %v931_v28, %v930_v27 }
 0x457   : > { %v2492_v30 = vpop.eup %2491 }
 0x458   : > { %v494_v31 = vsel %vm487_vm12, %v2492_v30, 0.0 }
 0x459   : > { %495 = vadd.xlane.f32.xlu1 %v494_v31  ;;  %v933_v31 = vld [vmem:[#allocation6 + $0x98] sm:$0xff] }
 0x45b   : > { %v2494_v32 = vpop.eup %2493 }
 0x45c   : > { %v661_v33 = vsel %vm487_vm12, %v2494_v32, 0.0 }
 0x45d   : > { %662 = vadd.xlane.f32.xlu1 %v661_v33  ;;  %v2131_v33 = vld [vmem:[%s3016_s4 + $0x4] ss:$0 sm:$0xff] }
 0x46e   : > { %499 = vrot.lane.b32.xlu1 %v2796_v50, %s2601_s8  ;;  %v2398_v50 = vpack.c.bf16 %v743_v49, %v742_v48 }
 0x470   : > { %2399 = vmatpush3.bf16.msra.mxu0 %v2398_v50 }
 0x471   : > { %2403 = vmatprep.subr.bf16.mxu0 %v2594_v34 }
 0x4e6   : > { %v496_v35 = vpop.xlane.xlu1 %495 }
 0x4e7   : > { %2495 = vrcp.f32 %v496_v35 }
 0x4ea   : > { %v663_v36 = vpop.xlane.xlu1 %662 }
 0x4eb   : > { %2497 = vrcp.f32 %v663_v36 }
 0x4ee   : > { %v500_v38 = vpop.permute.xlu1 %499 }
 0x4ef   : > { %2247 = vmatpush3.msra.mxu1 %v500_v38 }
 0x4f0   : > { %2256 = vmatprep.subr.mxu1 %v2596_v37 }
 0x4f1   : > { %v2496_v39 = vpop.eup %2495 }
 0x4f2   : > { %v498_v40 = vmul.f32 %v2496_v39, %v2492_v30  ;;  %v932_v30 = vld [vmem:[#allocation6 + $0x90] sm:$0xff] }
 0x4f4   : > { %2249 = vmatmul.mubr.msk.f32.vlgmr.msra.gmra.mrb[2].mxu1 %vm487_vm12, %v498_v40 }
 0x4f5   : > { %v2498_v44 = vpop.eup %2497  ;;  %2257 = vmatpush3.msra.mxu1 %v667_v43  ;;  %2258 = vmatprep.mubr.msk.f32.mxu1 %vm2595_vm2, %v2596_v37 }
 0x4f6   : > { %v665_v46 = vmul.f32 %v2498_v44, %v2494_v32  ;;  %2400 = vmatprep.subr.bf16.mxu1 %v2594_v34  ;;  %v2419_v32 = vpack.c.bf16 %v933_v31, %v932_v30 }
 0x4f8   : > { %2259 = vmatmul.mubr.msk.f32.vlgmr.msra.gmra.mrb[4].mxu1 %vm487_vm12, %v665_v46 }
 0x4f9   : > { %2402 = vmatpush3.bf16.msra.mxu1 %v2401_v45  ;;  %2272 = vmatprep.mubr.msk.f32.mxu1 %vm2595_vm2, %v2596_v37 }
 0x4fa   : > { %2409 = vmatprep.subr.bf16.mxu1 %v2594_v34 }
 0x5c7   : > { %v571_v51 = vpop.f32.mrb[2].mxu1 }
 0x5c8   : > { %v2250_v52 = vpop.f32.mrb[3].mxu1  ;;  %2273 = vmatmul.mubr.msk.f32.vlgmr.msra.gmra.mrb[6].mxu1 %vm412_vm3, %v571_v51 }
 0x5c9   : > { %2302 = vmatprep.mubr.msk.f32.mxu1 %vm2595_vm2, %v2596_v37  ;;  %2411 = vmatpush3.bf16.msra.mxu1 %v2410_v23 }
 0x5ca   : > { %2412 = vmatprep.subr.bf16.mxu1 %v2594_v34 }
 0x5cb   : > { %v738_v53 = vpop.f32.mrb[4].mxu1 }
 0x5cc   : > { %v2260_v54 = vpop.f32.mrb[5].mxu1  ;;  %2266 = vmatmul.mubr.msk.f32.vlgmr.msra.gmra.mrb[4].mxu0 %vm412_vm3, %v738_v53 }
 0x5cd   : > { %2283 = vmatprep.mubr.msk.f32.mxu0 %vm2595_vm2, %v2596_v37  ;;  %2405 = vmatpush3.bf16.msra.mxu0 %v2404_v8 }
 0x5ce   : > { %2406 = vmatprep.subr.bf16.mxu0 %v2594_v34  ;;  %2414 = vmatpush3.bf16.msra.mxu1 %v2413_v26  ;;  %v2136_v26 = vld [vmem:[%s3016_s4 + $0x7] ss:$0 sm:$0xff] }
 0x5cf   : > { %2415 = vmatprep.subr.bf16.mxu1 %v2594_v34 }
 0x5d1   : > { %2408 = vmatpush3.bf16.msra.mxu0 %v2407_v11 }
 0x5d2   : > { %2421 = vmatprep.subr.bf16.mxu0 %v2594_v34  ;;  %2417 = vmatpush3.bf16.msra.mxu1 %v2416_v29  ;;  %v2137_v29 = vld [vmem:[%s3016_s4 + $0x8] ss:$0 sm:$0xff] }
 0x5d3   : > { %2418 = vmatprep.subr.bf16.mxu1 %v2594_v34 }
 0x5d6   : > { %2420 = vmatpush3.bf16.msra.mxu1 %v2419_v32 }
 0x5d7   : > { %2321 = vmatprep.subr.mxu1 %v2596_v37 }
 0x69b   : > { %v886_v56 = vpop.f32.mrb[6].mxu1 }
 0x69c   : > { %v2274_v57 = vpop.f32.mrb[7].mxu1 }
 0x69f   : > { %v813_v58 = vpop.f32.mrb[4].mxu0 }
 0x6a0   : > { %v887_v60 = vadd.f32 %v886_v56, %v813_v58  ;;  %v2267_v61 = vpop.f32.mrb[5].mxu0 }
 0x6a1   : > { %v2602_v61 = vmov 1.0  }
 0x6a2   : > { %v895_v62 = vadd.f32 %v2128_v59, %v887_v60 }
 0x6a4   : > { %v896_v63 = vadd.f32 %v895_v62, %v2787_v47 }
 0x6a6   : > { %v899_v0 = vsel %vm236_vm1, %v896_v63, 0.0 }
 0x6a7   : > { %900 = vadd.xlane.f32.xlu1 %v899_v0 }
 0x734   : > { %v901_v1 = vpop.xlane.xlu1 %900 }
 0x735   : > { %v902_v2 = vmul.f32 0.03125, %v901_v1 }
 0x737   : > { %v903_v3 = vsub.f32 %v896_v63, %v902_v2 }
 0x739   : > { %v904_v4 = vmul.f32 %v903_v3, %v903_v3 }
 0x73b   : > { %v905_v5 = vsel %vm236_vm1, %v904_v4, 0.0 }
 0x73c   : > { %906 = vadd.xlane.f32.xlu0 %v905_v5 }
 0x7c9   : > { %v907_v47 = vpop.xlane.xlu0 %906 }
 0x7ca   : > { %v908_v12 = vmul.f32 0.03125, %v907_v47 }
 0x7cc   : > { %v909_v13 = vadd.f32 1e-12, %v908_v12 }
 0x7ce   : > { %2499 = vrsqrt.f32 %v909_v13  ;;  %v1144_v13 = vld [vmem:[#allocation6 + $0xa0] sm:$0xff] }
 0x7d8   : > { %v2500_v14 = vpop.eup %2499 }
 0x7d9   : > { %v911_v17 = vmul.f32 %v2500_v14, %v903_v3  ;;  %v2133_v3 = vld [vmem:[%s3016_s4 + $0x5] ss:$0 sm:$0xff]  ;;  %v1145_v14 = vld [vmem:[#allocation6 + $0xa8] sm:$0xff] }
 0x7db   : > { %v916_v19 = vmul.f32 %v2129_v16, %v911_v17  ;;  %v2422_v16 = vpack.c.bf16 %v1145_v14, %v1144_v13  ;;  %v1146_v17 = vld [vmem:[#allocation6 + $0xb0] sm:$0xff]  ;;  %v2147_v14 = vld [vmem:[%s3016_s4 + $0x9] ss:$0 sm:$0xff] }
 0x7dd   : > { %v2873_v20 = vadd.f32 %v2130_v18, %v916_v19  ;;  %v1147_v18 = vld [vmem:[#allocation6 + $0xb8] sm:$0xff] }
 0x7de   : > { %v2425_v19 = vpack.c.bf16 %v1147_v18, %v1146_v17 }
 0x7df   : > { %2284 = vmatmul.mubr.msk.f32.vlgmr.msra.gmra.mrb[6].mxu0 %vm236_vm1, %v2873_v20 }
 0x7e0   : > { %2313 = vmatprep.mubr.msk.f32.mxu0 %vm2595_vm2, %v2596_v37  ;;  %2423 = vmatpush3.bf16.msra.mxu0 %v2422_v16 }
 0x7e1   : > { %2424 = vmatprep.subr.bf16.mxu0 %v2594_v34 }
 0x7e4   : > { %2426 = vmatpush3.bf16.msra.mxu0 %v2425_v19 }
 0x7e5   : > { %2316 = vmatprep.subr.mxu0 %v2596_v37 }
 0x8b2   : > { %v1008_v35 = vpop.f32.mrb[6].mxu0 }
 0x8b3   : > { %v1009_v36 = vadd.f32 %v2131_v33, %v1008_v35  ;;  %v2285_v38 = vpop.f32.mrb[7].mxu0 }
 0x8b5   : > { %v1013_v39 = vmul.f32 0.70710677, %v1009_v36  ;;  %v1012_v0 = vmul.f32 0.5, %v1009_v36 }
 0x8b7   : > { %v1016_v40 = vand.u32 2147483647, %v1013_v39  ;;  %vm1014_vm13 = vcmp.lt.f32.partialorder %v1013_v39, 0.0 }
 0x8b8   : > { %v1015_v62 = vsel %vm1014_vm13, -1.0, %v2602_v61 }
 0x8b9   : > { %v1017_v41 = vmul.f32 0.3275911, %v1016_v40  ;;  %v1029_v43 = vsub.f32 0.0, %v1016_v40 }
 0x8bb   : > { %v1018_v42 = vadd.f32 1.0, %v1017_v41  ;;  %v1030_v45 = vmul.f32 %v1029_v43, %v1016_v40 }
 0x8bd   : > { %2501 = vrcp.f32 %v1018_v42  ;;  %v1031_v49 = vmul.f32 1.442695, %v1030_v45 }
 0x8bf   : > { %2503 = vpow2.f32 %v1031_v49 }
 0x8c7   : > { %v2502_v44 = vpop.eup %2501 }
 0x8c8   : > { %v1020_v46 = vmul.f32 1.0614054, %v2502_v44 }
 0x8c9   : > { %v2504_v58 = vpop.eup %2503 }
 0x8ca   : > { %v1021_v48 = vadd.f32 -1.4531521, %v1020_v46 }
 0x8cc   : > { %v1022_v50 = vmul.f32 %v2502_v44, %v1021_v48 }
 0x8ce   : > { %v1023_v51 = vadd.f32 1.4214138, %v1022_v50 }
 0x8d0   : > { %v1024_v52 = vmul.f32 %v2502_v44, %v1023_v51 }
 0x8d2   : > { %v1025_v53 = vadd.f32 -0.28449672, %v1024_v52 }
 0x8d4   : > { %v1026_v54 = vmul.f32 %v2502_v44, %v1025_v53 }
 0x8d6   : > { %v1027_v56 = vadd.f32 0.2548296, %v1026_v54 }
 0x8d8   : > { %v1028_v57 = vmul.f32 %v2502_v44, %v1027_v56 }
 0x8da   : > { %v1033_v59 = vmul.f32 %v2504_v58, %v1028_v57 }
 0x8dc   : > { %v1034_v60 = vsub.f32 1.0, %v1033_v59 }
 0x8de   : > { %v1035_v63 = vmul.f32 %v1034_v60, %v1015_v62 }
 0x8e0   : > { %v1036_v1 = vadd.f32 1.0, %v1035_v63  ;;  %v1390_v63 = vld [vmem:[#allocation6 + $0xc0] sm:$0xff] }
 0x8e2   : > { %v1037_v2 = vmul.f32 %v1036_v1, %v1012_v0  ;;  %v1391_v0 = vld [vmem:[#allocation6 + $0xc8] sm:$0xff] }
 0x8e4   : > { %2303 = vmatmul.mubr.msk.f32.vlgmr.msra.gmra.mrb[8].mxu1 %vm1043_vm14, %v1037_v2 }
 0x8e5   : > { %2323 = vmatprep.mubr.msk.f32.mxu1 %vm2595_vm2, %v2596_v37 }
 0x9b7   : > { %v1113_v4 = vpop.f32.mrb[8].mxu1 }
 0x9b8   : > { %v1114_v5 = vadd.f32 %v2133_v3, %v1113_v4  ;;  %v2304_v6 = vpop.f32.mrb[9].mxu1  ;;  %v2431_v3 = vpack.c.bf16 %v1391_v0, %v1390_v63 }
 0x9b9   : > { %v1558_v6 = vld [vmem:[#allocation6 + $0xd8] sm:$0xff] }
 0x9ba   : > { %v1117_v7 = vadd.f32 %v1114_v5, %v2873_v20  ;;  %v1557_v5 = vld [vmem:[#allocation6 + $0xd0] sm:$0xff] }
 0x9bc   : > { %v1120_v8 = vsel %vm236_vm1, %v1117_v7, 0.0 }
 0x9bd   : > { %1121 = vadd.xlane.f32.xlu1 %v1120_v8 }
 0xa4a   : > { %v1122_v9 = vpop.xlane.xlu1 %1121 }
 0xa4b   : > { %v1123_v10 = vmul.f32 0.03125, %v1122_v9 }
 0xa4d   : > { %v1124_v11 = vsub.f32 %v1117_v7, %v1123_v10  ;;  %v2428_v7 = vpack.c.bf16 %v1558_v6, %v1557_v5 }
 0xa4f   : > { %v1125_v47 = vmul.f32 %v1124_v11, %v1124_v11 }
 0xa51   : > { %v1126_v12 = vsel %vm236_vm1, %v1125_v47, 0.0 }
 0xa52   : > { %1127 = vadd.xlane.f32.xlu1 %v1126_v12 }
 0xadf   : > { %v1128_v20 = vpop.xlane.xlu1 %1127 }
 0xae0   : > { %v1129_v21 = vmul.f32 0.03125, %v1128_v20 }
 0xae2   : > { %v1130_v22 = vadd.f32 1e-12, %v1129_v21 }
 0xae4   : > { %2505 = vrsqrt.f32 %v1130_v22 }
 0xaee   : > { %v2506_v23 = vpop.eup %2505 }
 0xaef   : > { %v1132_v25 = vmul.f32 %v2506_v23, %v1124_v11 }
 0xaf1   : > { %v1137_v27 = vmul.f32 %v2135_v24, %v1132_v25 }
 0xaf3   : > { %v2904_v28 = vadd.f32 %v2136_v26, %v1137_v27  ;;  %v1737_v26 = vld [vmem:[#allocation6 + $0xe0] sm:$0xff]  ;;  %v1738_v27 = vld [vmem:[#allocation6 + $0xe8] sm:$0xff] }
 0xaf5   : > { %2314 = vmatmul.mubr.msk.f32.vlgmr.msra.gmra.mrb[8].mxu0 %vm236_vm1, %v2904_v28 }
 0xaf6   : > { %2318 = vmatprep.mubr.msk.f32.mxu0 %vm2595_vm2, %v2596_v37 }
 0xbc8   : > { %v1222_v30 = vpop.f32.mrb[8].mxu0 }
 0xbc9   : > { %v1223_v31 = vadd.f32 %v2137_v29, %v1222_v30  ;;  %v2315_v32 = vpop.f32.mrb[9].mxu0  ;;  %v2434_v29 = vpack.c.bf16 %v1738_v27, %v1737_v26  ;;  %v1739_v30 = vld [vmem:[#allocation6 + $0xf0] sm:$0xff] }
 0xbcb   : > { %1394 = vrot.lane.b32.xlu0 %v1223_v31, %s2599_s22  ;;  %1227 = vrot.lane.b32.xlu1 %v1223_v31, %s2598_s28  ;;  %s175_s22 = scalar_lea.vmem %s3017_s5, %s2114_s18 }
 0xbcf   : > { %1392 = vrot.lane.b32.xlu1 %v1223_v31, %s2597_s11 }
 0xc3d   : > { %v1228_v33 = vpop.permute.xlu1 %1227  ;;  %v1395_v35 = vpop.permute.xlu0 %1394 }
 0xc3e   : > { %2317 = vmatpush3.xpose.msk.msra.mxu0 %vm412_vm3, %v1228_v33 }
 0xc3f   : > { %2326 = vmatprep.subr.mxu0 %v2596_v37 }
 0xc41   : > { %2319 = vmatmul.mubr.msk.f32.vlgmr.msra.gmra.mrb[10].mxu0 %vm412_vm3, %v1223_v31  ;;  %v1393_v36 = vpop.permute.xlu1 %1392 }
 0xc42   : > { %2327 = vmatpush3.xpose.msk.msra.mxu0 %vm412_vm3, %v1395_v35  ;;  %2328 = vmatprep.mubr.msk.f32.mxu0 %vm2595_vm2, %v2596_v37 }
 0xc43   : > { %2427 = vmatprep.subr.bf16.mxu0 %v2594_v34 }
 0xc45   : > { %2329 = vmatmul.mubr.msk.f32.vlgmr.msra.gmra.mrb[12].mxu0 %vm412_vm3, %v1393_v36 }
 0xc46   : > { %2340 = vmatprep.mubr.msk.f32.mxu0 %vm2595_vm2, %v2596_v37  ;;  %2429 = vmatpush3.bf16.msra.mxu0 %v2428_v7 }
 0xc47   : > { %2433 = vmatprep.subr.bf16.mxu0 %v2594_v34 }
 0xd14   : > { %v1299_v38 = vpop.f32.mrb[10].mxu0 }
 0xd15   : > { %v1300_v39 = vadd.f32 %v1299_v38, %v2831_v15  ;;  %v2320_v40 = vpop.f32.mrb[11].mxu0  ;;  %v2148_v38 = vld [vmem:[%s3016_s4 + $0xa] ss:$0 sm:$0xff] }
 0xd16   : > { %v2149_v40 = vld [vmem:[%s3016_s4 + $0xb] ss:$0 sm:$0xff] }
 0xd17   : > { %v1303_v41 = vsel %vm487_vm12, %v1300_v39, -inf }
 0xd18   : > { %1304 = vmax.xlane.f32.xlu1 %v1303_v41  ;;  %v1466_v42 = vpop.f32.mrb[12].mxu0 }
 0xd19   : > { %v1467_v43 = vadd.f32 %v1466_v42, %v2831_v15  ;;  %v2330_v44 = vpop.f32.mrb[13].mxu0 }
 0xd1a   : > { %v1742_v44 = vld [vmem:[#allocation6 + $0x108] sm:$0xff] }
 0xd1b   : > { %v1470_v45 = vsel %vm487_vm12, %v1467_v43, -inf }
 0xd1c   : > { %1471 = vmax.xlane.f32.xlu0 %v1470_v45 }
 0xda5   : > { %v1305_v46 = vpop.xlane.xlu1 %1304 }
 0xda6   : > { %v1306_v48 = vsub.f32 %v1300_v39, %v1305_v46  ;;  %v1743_v46 = vld [vmem:[#allocation6 + $0x110] sm:$0xff] }
 0xda8   : > { %v1307_v49 = vmul.f32 1.442695, %v1306_v48  ;;  %v1744_v48 = vld [vmem:[#allocation6 + $0x118] sm:$0xff] }
 0xda9   : > { %v1472_v50 = vpop.xlane.xlu0 %1471 }
 0xdaa   : > { %2507 = vpow2.f32 %v1307_v49  ;;  %v1473_v51 = vsub.f32 %v1467_v43, %v1472_v50  ;;  %v1741_v43 = vld [vmem:[#allocation6 + $0x100] sm:$0xff]  ;;  %v2443_v49 = vpack.c.bf16 %v1744_v48, %v1743_v46 }
 0xdab   : > { %v2440_v45 = vpack.c.bf16 %v1742_v44, %v1741_v43  ;;  %v1745_v50 = vld [vmem:[#allocation6 + $0x120] sm:$0xff] }
 0xdac   : > { %v1474_v52 = vmul.f32 1.442695, %v1473_v51  ;;  %v1746_v51 = vld [vmem:[#allocation6 + $0x128] sm:$0xff]  ;;  %v2154_v43 = vld [vmem:[%s3016_s4 + $0xe] ss:$0 sm:$0xff] }
 0xdae   : > { %2509 = vpow2.f32 %v1474_v52  ;;  %v2446_v52 = vpack.c.bf16 %v1746_v51, %v1745_v50 }
 0xdb4   : > { %v2508_v53 = vpop.eup %2507 }
 0xdb5   : > { %v1309_v54 = vsel %vm487_vm12, %v2508_v53, 0.0 }
 0xdb6   : > { %1310 = vadd.xlane.f32.xlu0 %v1309_v54 }
 0xdb8   : > { %v2510_v56 = vpop.eup %2509 }
 0xdb9   : > { %v1476_v57 = vsel %vm487_vm12, %v2510_v56, 0.0 }
 0xdba   : > { %1477 = vadd.xlane.f32.xlu1 %v1476_v57 }
 0xdcb   : > { %1481 = vrot.lane.b32.xlu1 %v1223_v31, %s2600_s7 }
 0xdcc   : > { %1314 = vrot.lane.b32.xlu0 %v1223_v31, %s2601_s8  ;;  %v1740_v31 = vld [vmem:[#allocation6 + $0xf8] sm:$0xff] }
 0xdcd   : > { %v2437_v32 = vpack.c.bf16 %v1740_v31, %v1739_v30 }
 0xe43   : > { %v1311_v15 = vpop.xlane.xlu0 %1310 }
 0xe44   : > { %2511 = vrcp.f32 %v1311_v15 }
 0xe47   : > { %v1478_v58 = vpop.xlane.xlu1 %1477  ;;  %v1315_v59 = vpop.permute.xlu0 %1314 }
 0xe48   : > { %2513 = vrcp.f32 %v1478_v58  ;;  %2322 = vmatpush3.msra.mxu1 %v1315_v59 }
 0xe49   : > { %2331 = vmatprep.subr.mxu1 %v2596_v37 }
 0xe4b   : > { %v1482_v1 = vpop.permute.xlu1 %1481 }
 0xe4e   : > { %v2512_v60 = vpop.eup %2511 }
 0xe4f   : > { %v1313_v62 = vmul.f32 %v2512_v60, %v2508_v53  ;;  %v1747_v53 = vld [vmem:[#allocation6 + $0x130] sm:$0xff] }
 0xe51   : > { %2324 = vmatmul.mubr.msk.f32.vlgmr.msra.gmra.mrb[10].mxu1 %vm487_vm12, %v1313_v62 }
 0xe52   : > { %v2514_v2 = vpop.eup %2513  ;;  %2332 = vmatpush3.msra.mxu1 %v1482_v1  ;;  %2333 = vmatprep.mubr.msk.f32.mxu1 %vm2595_vm2, %v2596_v37 }
 0xe53   : > { %v1480_v4 = vmul.f32 %v2514_v2, %v2510_v56  ;;  %2430 = vmatprep.subr.bf16.mxu1 %v2594_v34  ;;  %v2150_v56 = vld [vmem:[%s3016_s4 + $0xc] ss:$0 sm:$0xff] }
 0xe55   : > { %2334 = vmatmul.mubr.msk.f32.vlgmr.msra.gmra.mrb[12].mxu1 %vm487_vm12, %v1480_v4 }
 0xe56   : > { %2432 = vmatpush3.bf16.msra.mxu1 %v2431_v3  ;;  %2347 = vmatprep.mubr.msk.f32.mxu1 %vm2595_vm2, %v2596_v37 }
 0xe57   : > { %2439 = vmatprep.subr.bf16.mxu1 %v2594_v34 }
 0xf24   : > { %v1386_v8 = vpop.f32.mrb[10].mxu1 }
 0xf25   : > { %v2325_v9 = vpop.f32.mrb[11].mxu1  ;;  %2348 = vmatmul.mubr.msk.f32.vlgmr.msra.gmra.mrb[14].mxu1 %vm412_vm3, %v1386_v8 }
 0xf26   : > { %2377 = vmatprep.mubr.msk.f32.mxu1 %vm2595_vm2, %v2596_v37  ;;  %2441 = vmatpush3.bf16.msra.mxu1 %v2440_v45  ;;  %v2155_v45 = vld [vmem:[%s3016_s4 + $0xf] ss:$0 sm:$0xff] }
 0xf27   : > { %2442 = vmatprep.subr.bf16.mxu1 %v2594_v34 }
 0xf28   : > { %v1553_v10 = vpop.f32.mrb[12].mxu1 }
 0xf29   : > { %v2335_v11 = vpop.f32.mrb[13].mxu1  ;;  %2341 = vmatmul.mubr.msk.f32.vlgmr.msra.gmra.mrb[14].mxu0 %vm412_vm3, %v1553_v10 }
 0xf2a   : > { %2358 = vmatprep.mubr.msk.f32.mxu0 %vm2595_vm2, %v2596_v37  ;;  %2435 = vmatpush3.bf16.msra.mxu0 %v2434_v29 }
 0xf2b   : > { %2436 = vmatprep.subr.bf16.mxu0 %v2594_v34  ;;  %2444 = vmatpush3.bf16.msra.mxu1 %v2443_v49 }
 0xf2c   : > { %2445 = vmatprep.subr.bf16.mxu1 %v2594_v34 }
 0xf2e   : > { %2438 = vmatpush3.bf16.msra.mxu0 %v2437_v32  ;;  %v1964_v32 = vld [vmem:[%s3016_s4 + $0x18] sm:$0xff] }
 0xf2f   : > { %2451 = vmatprep.subr.bf16.mxu0 %v2594_v34  ;;  %2447 = vmatpush3.bf16.msra.mxu1 %v2446_v52 }
 0xf30   : > { %2448 = vmatprep.subr.bf16.mxu1 %v2594_v34 }
 0xff8   : > { %v1701_v47 = vpop.f32.mrb[14].mxu1 }
 0xff9   : > { %v2349_v12 = vpop.f32.mrb[15].mxu1 }
 0xffc   : > { %v1628_v13 = vpop.f32.mrb[14].mxu0 }
 0xffd   : > { %v1702_v16 = vadd.f32 %v1701_v47, %v1628_v13  ;;  %v2342_v17 = vpop.f32.mrb[15].mxu0 }
 0xfff   : > { %v1710_v18 = vadd.f32 %v2147_v14, %v1702_v16 }
0x1001   : > { %v1711_v19 = vadd.f32 %v1710_v18, %v2904_v28 }
0x1003   : > { %v1714_v20 = vsel %vm236_vm1, %v1711_v19, 0.0 }
0x1004   : > { %1715 = vadd.xlane.f32.xlu1 %v1714_v20 }
0x1091   : > { %v1716_v21 = vpop.xlane.xlu1 %1715 }
0x1092   : > { %v1717_v22 = vmul.f32 0.03125, %v1716_v21  ;;  %v2152_v21 = vld [vmem:[%s3016_s4 + $0xd] ss:$0 sm:$0xff] }
0x1094   : > { %v1718_v23 = vsub.f32 %v1711_v19, %v1717_v22 }
0x1096   : > { %v1719_v24 = vmul.f32 %v1718_v23, %v1718_v23 }
0x1098   : > { %v1720_v25 = vsel %vm236_vm1, %v1719_v24, 0.0 }
0x1099   : > { %1721 = vadd.xlane.f32.xlu0 %v1720_v25 }
0x1126   : > { %v1722_v28 = vpop.xlane.xlu0 %1721 }
0x1127   : > { %v1723_v33 = vmul.f32 0.03125, %v1722_v28  ;;  %v1965_v28 = vld [vmem:[%s3016_s4 + $0x20] sm:$0xff] }
0x1129   : > { %v1724_v35 = vadd.f32 1e-12, %v1723_v33  ;;  %v1966_v33 = vld [vmem:[%s3016_s4 + $0x28] sm:$0xff] }
0x112b   : > { %2515 = vrsqrt.f32 %v1724_v35  ;;  %v2452_v35 = vpack.c.bf16 %v1965_v28, %v1964_v32 }
0x1135   : > { %v2516_v36 = vpop.eup %2515 }
0x1136   : > { %v1726_v39 = vmul.f32 %v2516_v36, %v1718_v23  ;;  %v1967_v36 = vld [vmem:[%s3016_s4 + $0x30] sm:$0xff] }
0x1138   : > { %v1731_v41 = vmul.f32 %v2148_v38, %v1726_v39  ;;  %v2455_v38 = vpack.c.bf16 %v1967_v36, %v1966_v33 }
0x113a   : > { %v1736_v42 = vadd.f32 %v2149_v40, %v1731_v41 }
0x113c   : > { %2359 = vmatmul.mubr.msk.f32.vlgmr.msra.gmra.mrb[16].mxu0 %vm236_vm1, %v1736_v42 }
0x113d   : > { %2388 = vmatprep.mubr.msk.f32.mxu0 %vm2595_vm2, %v2596_v37  ;;  %v1748_v37 = vld [vmem:[#allocation6 + $0x138] sm:$0xff]  ;;  %2453 = vmatpush3.bf16.msra.mxu0 %v2452_v35 }
0x113e   : > { %v2449_v54 = vpack.c.bf16 %v1748_v37, %v1747_v53  ;;  %2454 = vmatprep.subr.bf16.mxu0 %v2594_v34 }
0x1140   : > { %2450 = vmatpush3.bf16.msra.mxu1 %v2449_v54  ;;  %v2043_v54 = vshrl.u32 %v261_v55, 7 }
0x1141   : > { %2456 = vmatpush3.bf16.msra.mxu0 %v2455_v38 }
0x120f   : > { %v1823_v57 = vpop.f32.mrb[16].mxu0 }
0x1210   : > { %v1824_v15 = vadd.f32 %v2150_v56, %v1823_v57  ;;  %v2360_v58 = vpop.f32.mrb[17].mxu0  ;;  %v1968_v56 = vld [vmem:[%s3016_s4 + $0x12] sm:$0x1]  ;;  %v2044_v57 = vsub.s32 0, %v2043_v54 }
0x1212   : > { %v1828_v59 = vmul.f32 0.70710677, %v1824_v15  ;;  %v1827_v18 = vmul.f32 0.5, %v1824_v15 }
0x1214   : > { %v1831_v60 = vand.u32 2147483647, %v1828_v59  ;;  %vm1829_vm15 = vcmp.lt.f32.partialorder %v1828_v59, 0.0 }
0x1215   : > { %v1830_v16 = vsel %vm1829_vm15, -1.0, %v2602_v61 }
0x1216   : > { %v1832_v62 = vmul.f32 0.3275911, %v1831_v60  ;;  %v1844_v0 = vsub.f32 0.0, %v1831_v60 }
0x1218   : > { %v1833_v63 = vadd.f32 1.0, %v1832_v62  ;;  %v1845_v2 = vmul.f32 %v1844_v0, %v1831_v60 }
0x121a   : > { %2517 = vrcp.f32 %v1833_v63  ;;  %v1846_v5 = vmul.f32 1.442695, %v1845_v2 }
0x121c   : > { %2519 = vpow2.f32 %v1846_v5 }
0x1224   : > { %v2518_v1 = vpop.eup %2517 }
0x1225   : > { %v1835_v3 = vmul.f32 1.0614054, %v2518_v1 }
0x1226   : > { %v2520_v12 = vpop.eup %2519 }
0x1227   : > { %v1836_v4 = vadd.f32 -1.4531521, %v1835_v3 }
0x1229   : > { %v1837_v6 = vmul.f32 %v2518_v1, %v1836_v4 }
0x122b   : > { %v1838_v7 = vadd.f32 1.4214138, %v1837_v6 }
0x122d   : > { %v1839_v8 = vmul.f32 %v2518_v1, %v1838_v7 }
0x122f   : > { %v1840_v9 = vadd.f32 -0.28449672, %v1839_v8 }
0x1231   : > { %v1841_v10 = vmul.f32 %v2518_v1, %v1840_v9 }
0x1233   : > { %v1842_v11 = vadd.f32 0.2548296, %v1841_v10 }
0x1235   : > { %v1843_v47 = vmul.f32 %v2518_v1, %v1842_v11 }
0x1237   : > { %v1848_v13 = vmul.f32 %v2520_v12, %v1843_v47 }
0x1239   : > { %v1849_v14 = vsub.f32 1.0, %v1848_v13 }
0x123b   : > { %v1850_v17 = vmul.f32 %v1849_v14, %v1830_v16 }
0x123d   : > { %v1851_v19 = vadd.f32 1.0, %v1850_v17 }
0x123f   : > { %v1852_v20 = vmul.f32 %v1851_v19, %v1827_v18 }
0x1241   : > { %2378 = vmatmul.mubr.msk.f32.vlgmr.msra.gmra.mrb[16].mxu1 %vm1043_vm14, %v1852_v20 }
0x1314   : > { %v1927_v22 = vpop.f32.mrb[16].mxu1 }
0x1315   : > { %v1928_v23 = vadd.f32 %v2152_v21, %v1927_v22  ;;  %v2379_v24 = vpop.f32.mrb[17].mxu1 }
0x1317   : > { %v1931_v25 = vadd.f32 %v1928_v23, %v1736_v42 }
0x1319   : > { %v1934_v26 = vsel %vm236_vm1, %v1931_v25, 0.0 }
0x131a   : > { %1935 = vadd.xlane.f32.xlu0 %v1934_v26 }
0x13a7   : > { %v1936_v27 = vpop.xlane.xlu0 %1935 }
0x13a8   : > { %v1937_v29 = vmul.f32 0.03125, %v1936_v27 }
0x13aa   : > { %v1938_v61 = vsub.f32 %v1931_v25, %v1937_v29 }
0x13ac   : > { %v1939_v30 = vmul.f32 %v1938_v61, %v1938_v61 }
0x13ae   : > { %v1940_v31 = vsel %vm236_vm1, %v1939_v30, 0.0 }
0x13af   : > { %1941 = vadd.xlane.f32.xlu1 %v1940_v31 }
0x143c   : > { %v1942_v39 = vpop.xlane.xlu1 %1941 }
0x143d   : > { %v1943_v40 = vmul.f32 0.03125, %v1942_v39 }
0x143f   : > { %v1944_v41 = vadd.f32 1e-12, %v1943_v40 }
0x1441   : > { %2521 = vrsqrt.f32 %v1944_v41 }
0x144b   : > { %v2522_v42 = vpop.eup %2521 }
0x144c   : > { %v1946_v44 = vmul.f32 %v2522_v42, %v1938_v61 }
0x144e   : > { %v1951_v46 = vmul.f32 %v2154_v43, %v1946_v44 }
0x1450   : > { %v1956_v48 = vadd.f32 %v2155_v45, %v1951_v46 }
0x1452   : > { %v1957_v34 = vsel %vm236_vm1, %v1956_v48, -inf }
0x1453   : > { %v1958_v49 = vrot.slane %v1957_v34, 4 }
0x1455   : > { %v1959_v50 = vmax.f32 %v1957_v34, %v1958_v49 }
0x1457   : > { %v1960_v51 = vrot.slane %v1959_v50, 2 }
0x1459   : > { %v1961_v52 = vmax.f32 %v1959_v50, %v1960_v51 }
0x145b   : > { %v1962_v53 = vrot.slane %v1961_v52, 1 }
0x145d   : > { %v1963_v37 = vmax.f32 %v1961_v52, %v1962_v53 }
0x145f   : > { %2389 = vmatmul.mubr.msk.f32.vlgmr.msra.gmra.mrb[18].mxu0 %vm236_vm1, %v1963_v37 }
0x1532   : > { %v2038_v15 = vpop.f32.mrb[18].mxu0 }
0x1533   : > { %v2039_v58 = vadd.f32 %v2038_v15, %v1968_v56  ;;  %v2390_v59 = vpop.f32.mrb[19].mxu0 }
0x1535   : > { %v2045_v60 = vrot.slane %v2039_v58, %v2044_v57 }
0x1537   : > { %2046 = vst [vmem:[%s175_s22] sm:$0xff] %v2045_v60 }
0x1538 PF: > { %s26_s1 = sadd.s32 1, %s2587_s1  }
0x1539   : > { %p23_p13 = scmp.ge.s32.totalorder %s26_s1, 4  }
0x153b   :  { %25 = sbr.rel (!%p23_p13) target bundleno = 26 (0x1a), region = 73 }
0x1542   :  { %2066 = vsyncpa [#allocation7], 1 }
0x1543   :  { %2068 = vsyncpa [#allocation7 + $0x1], 1 }

</bundles_post_ra>
